<compile_context>
chip_gen: v5e
topology: v5e:2x2
jax: 0.10.0
libtpu: 0.0.40
codegen_flags: <defaults>
</compile_context>

<pallas_src>
import numpy as np

import jax
import jax.numpy as jnp
from jax import lax
from jax.experimental import pallas as pl
from jax.experimental.pallas import tpu as pltpu


# ----------------------------------------------------------------------------
# in-kernel helpers
# ----------------------------------------------------------------------------
def _layer_norm(x, g, b, eps=1e-5):
    # torch nn.LayerNorm over last dim: biased variance, eps inside sqrt.
    mu = jnp.mean(x, axis=-1, keepdims=True)
    xc = x - mu
    var = jnp.mean(xc * xc, axis=-1, keepdims=True)
    return xc * lax.rsqrt(var + eps) * g + b


def _erf(z):
    # Abramowitz & Stegun 7.1.26 rational approximation, |err| <= 1.5e-7
    # (float32-level match to torch.erf).  exp() lands on the EUP slot.
    t = 1.0 / (1.0 + 0.3275911 * jnp.abs(z))
    poly = t * (0.254829592
                + t * (-0.284496736
                       + t * (1.421413741
                              + t * (-1.453152027
                                     + t * 1.061405429))))
    y = 1.0 - poly * jnp.exp(-z * z)
    return jnp.where(z >= 0.0, y, -y)


def _gelu_exact(x):
    # torch nn.GELU() default (approximate='none'): 0.5*x*(1+erf(x/sqrt(2)))
    return 0.5 * x * (1.0 + _erf(x * np.float32(1.0 / np.sqrt(2.0))))


# ----------------------------------------------------------------------------
# fused kernel body: one grid step == one Linformer layer
# (layer 0 additionally applies the graph->sequence projection + PE)
# ----------------------------------------------------------------------------
def make_encoder_kernel(heads, dim_head, n_pad, n_real):
    scale = np.float32(dim_head ** -0.5)
    bf16 = jnp.bfloat16

    def kernel(x_ref, gw_ref, pe_ref, wq_ref, wk_ref, pkT_ref, wo_ref,
               w1_ref, b1_ref, w2_ref, vec_ref, o_ref):
        l = pl.program_id(0)

        # ---- layer 0: GraphToSequenceConverter.proj (+bias folded into PE) ----
        @pl.when(l == 0)
        def _():
            o_ref[...] = (jnp.dot(x_ref[...], gw_ref[...],
                                  preferred_element_type=jnp.float32)
                          + pe_ref[...])

        x = o_ref[...]                                   # (n_pad, d)  f32, resident
        v = vec_ref[...]                                 # (6, d)      f32
        ln1_g, ln1_b = v[0:1, :], v[1:2, :]
        ln2_g, ln2_b = v[2:3, :], v[3:4, :]
        bo, b2 = v[4:5, :], v[5:6, :]

        # ---- PreNorm + LinformerSelfAttention (one_kv_head, share_kv) ----
        a = _layer_norm(x, ln1_g, ln1_b).astype(bf16)
        q = jnp.dot(a, wq_ref[...],
                    preferred_element_type=jnp.float32) * scale       # (n, h*dh)
        keys = jnp.dot(a, wk_ref[...],
                       preferred_element_type=jnp.float32)            # (n, dh)

        # zero the padded tail rows so they never leak into the k-projection
        row_mask = lax.broadcasted_iota(jnp.int32, (n_pad, 1), 0) < n_real
        keys = jnp.where(row_mask, keys, 0.0).astype(bf16)

        # project keys (= values, share_kv=True) along the sequence dim: (k, dh)
        kp = jnp.dot(pkT_ref[:, :n_pad], keys,
                     preferred_element_type=jnp.float32).astype(bf16)

        q_b = q.astype(bf16)
        head_outs = []
        for h in range(heads):                                          # unrolled (8)
            qh = q_b[:, h * dim_head:(h + 1) * dim_head]                # (n, dh)
            dots = lax.dot_general(qh, kp, (((1,), (1,)), ((), ())),
                                   preferred_element_type=jnp.float32)  # (n, k)
            dots = dots - jnp.max(dots, axis=-1, keepdims=True)
            e = jnp.exp(dots)
            attn = e * pl.reciprocal(jnp.sum(e, axis=-1, keepdims=True),
                                     approx=True)
            head_outs.append(jnp.dot(attn.astype(bf16), kp,
                                     preferred_element_type=jnp.float32))
        heads_cat = jnp.concatenate(head_outs, axis=-1).astype(bf16)    # (n, h*dh)
        attn_out = jnp.dot(heads_cat, wo_ref[...],
                           preferred_element_type=jnp.float32)          # ONE matmul
        x = x + attn_out + bo                                           # residual

        # ---- PreNorm + FeedForward (d -> 4d -> d, exact GELU) ----
        y = _layer_norm(x, ln2_g, ln2_b).astype(bf16)
        h1 = jnp.dot(y, w1_ref[...],
                     preferred_element_type=jnp.float32) + b1_ref[...]
        h2 = jnp.dot(_gelu_exact(h1).astype(bf16), w2_ref[...],
                     preferred_element_type=jnp.float32) + b2
        o_ref[...] = x + h2                                              # residual

    return kernel


# ----------------------------------------------------------------------------
# parameters (deterministic, synthetic); matmul weights stored in bf16
# ----------------------------------------------------------------------------
def init_params(key, in_ch, hidden, nhead, layers, max_seq, k_proj):
    dh = hidden // nhead
    ks = iter(jax.random.split(key, 16))
    bf = jnp.bfloat16

    def nrm(shape, scale=0.05, dtype=jnp.float32):
        return (scale * jax.random.normal(next(ks), shape,
                                          dtype=jnp.float32)).astype(dtype)

    return {
        "g2s_w": nrm((in_ch, hidden), dtype=bf),          # Linear(in_ch, hidden)
        "pe": 0.01 * jax.random.normal(next(ks), (max_seq, hidden),
                                       dtype=jnp.float32),  # learnable PE
        "g2s_b": nrm((1, hidden)),                        # proj bias (folded into PE)
        # per-layer matmul weights, stacked on a leading layer axis (bf16)
        "wq": nrm((layers, hidden, hidden), dtype=bf),    # to_q (no bias)
        "wk": nrm((layers, hidden, dh), dtype=bf),        # to_k (one_kv_head)
        "pkT": nrm((layers, k_proj, max_seq), dtype=bf),  # proj_k, pre-transposed
        "wo": nrm((layers, hidden, hidden), dtype=bf),    # to_out weight
        "w1": nrm((layers, hidden, 4 * hidden), dtype=bf),  # FF w1
        "w2": nrm((layers, 4 * hidden, hidden), dtype=bf),  # FF w2
        "b1": nrm((layers, 1, 4 * hidden)),               # FF b1 (f32)
        # small per-layer vectors packed into one array: rows =
        # [ln1_g, ln1_b, ln2_g, ln2_b, to_out bias, FF b2]
        "vecs": jnp.stack([
            jnp.ones((layers, hidden), jnp.float32),
            jnp.zeros((layers, hidden), jnp.float32),
            jnp.ones((layers, hidden), jnp.float32),
            jnp.zeros((layers, hidden), jnp.float32),
            nrm((layers, hidden)),
            nrm((layers, hidden)),
        ], axis=1),
    }


# ----------------------------------------------------------------------------
# jitted numeric forward: single pallas_call, grid over layers
# ----------------------------------------------------------------------------
@jax.jit
def _encoder_forward_jit(x_sel, params):
    n, in_ch = x_sel.shape
    hidden = params["g2s_w"].shape[1]
    dh = params["wk"].shape[-1]
    nhead = hidden // dh
    layers = params["wq"].shape[0]
    k_proj = params["pkT"].shape[1]

    n_pad = ((n + 15) // 16) * 16                     # bf16 sublane alignment
    x_pad = jnp.pad(x_sel, ((0, n_pad - n), (0, 0))).astype(jnp.bfloat16)

    pe = params["pe"]
    if pe.shape[0] < n_pad:                           # static guard; demo never hits
        pe = jnp.pad(pe, ((0, n_pad - pe.shape[0]), (0, 0)))
    pe_in = pe[:n_pad] + params["g2s_b"]              # fold proj bias into PE slab

    pkT = params["pkT"]
    if pkT.shape[2] < n_pad:                          # static guard; demo never hits
        pkT = jnp.pad(pkT, ((0, 0), (0, 0), (0, n_pad - pkT.shape[2])))
    seq_cols = pkT.shape[2]

    kernel = make_encoder_kernel(nhead, dh, n_pad, n)

    def fixed(shp):        # layer-invariant input: fetched once, stays resident
        return pl.BlockSpec(shp, lambda l, _s=len(shp): (0,) * _s)

    def per_layer(shp):    # leading (squeezed) layer axis streamed per grid step
        return pl.BlockSpec((None,) + shp,
                            lambda l, _s=len(shp): (l,) + (0,) * _s)

    out = pl.pallas_call(
        kernel,
        out_shape=jax.ShapeDtypeStruct((n_pad, hidden), jnp.float32),
        grid=(layers,),
        in_specs=[
            fixed((n_pad, in_ch)),               # x (graph node features, bf16)
            fixed((in_ch, hidden)),              # g2s proj weight
            fixed((n_pad, hidden)),              # PE (+proj bias), f32
            per_layer((hidden, hidden)),         # wq
            per_layer((hidden, dh)),             # wk
            per_layer((k_proj, seq_cols)),       # proj_k^T
            per_layer((hidden, hidden)),         # wo
            per_layer((hidden, 4 * hidden)),     # FF w1
            per_layer((1, 4 * hidden)),          # FF b1
            per_layer((4 * hidden, hidden)),     # FF w2
            per_layer((6, hidden)),              # packed small vectors
        ],
        out_specs=fixed((n_pad, hidden)),        # constant index -> VMEM-resident acc
        compiler_params=pltpu.CompilerParams(
            dimension_semantics=("arbitrary",)),
    )(x_pad, params["g2s_w"], pe_in,
      params["wq"], params["wk"], pkT, params["wo"],
      params["w1"], params["b1"], params["w2"], params["vecs"])

    return out[None, :n]                              # (1, n, hidden)


def transformer_encoder_forward(x, edge_index, params, *, max_seq):
    # Host-side glue (data-dependent shape): sorted-unique source nodes,
    # truncated to max_seq -- same as torch.unique(edge_index[0])[:max_seq].
    # TODO(synk): batch != None path (per-graph masks + pad_sequence) not implemented.
    nodes = np.unique(np.asarray(edge_index[0]))[:max_seq]
    x_sel = jnp.take(x, jnp.asarray(nodes), axis=0)   # (n, in_ch)
    return _encoder_forward_jit(x_sel, params)


# ----------------------------------------------------------------------------
if __name__ == "__main__":
    IN_CH, HIDDEN, NHEAD, LAYERS, MAX_SEQ, K_PROJ = 16, 32, 8, 4, 64, 256
    NUM_NODES, NUM_EDGES = 12, 24

    key = jax.random.PRNGKey(0)
    kx, ks, kd, kp = jax.random.split(key, 4)
    x = jax.random.normal(kx, (NUM_NODES, IN_CH), dtype=jnp.float32)
    src = jax.random.randint(ks, (NUM_EDGES,), 0, NUM_NODES, dtype=jnp.int32)
    dst = jax.random.randint(kd, (NUM_EDGES,), 0, NUM_NODES, dtype=jnp.int32)
    edge_index = jnp.stack([src, dst], axis=0)        # (2, E)

    params = init_params(kp, IN_CH, HIDDEN, NHEAD, LAYERS, MAX_SEQ, K_PROJ)

    out = transformer_encoder_forward(x, edge_index, params, max_seq=MAX_SEQ)
    out = jax.block_until_ready(out)
    assert out.shape[0] == 1 and out.shape[2] == HIDDEN
    assert bool(jnp.all(jnp.isfinite(out)))
    print("KERNEL_OK")
</pallas_src>

<mosaic_0001>
module attributes {stable_mosaic.version = 11 : i64} {
  func.func @kernel(%arg0: i32, %arg1: memref<16x16xbf16, #tpu.memory_space<vmem>>, %arg2: memref<16x32xbf16, #tpu.memory_space<vmem>>, %arg3: memref<16x32xf32, #tpu.memory_space<vmem>>, %arg4: memref<1x32x32xbf16, #tpu.memory_space<vmem>>, %arg5: memref<1x32x4xbf16, #tpu.memory_space<vmem>>, %arg6: memref<1x256x64xbf16, #tpu.memory_space<vmem>>, %arg7: memref<1x32x32xbf16, #tpu.memory_space<vmem>>, %arg8: memref<1x32x128xbf16, #tpu.memory_space<vmem>>, %arg9: memref<1x1x128xf32, #tpu.memory_space<vmem>>, %arg10: memref<1x128x32xbf16, #tpu.memory_space<vmem>>, %arg11: memref<1x6x32xf32, #tpu.memory_space<vmem>>, %arg12: memref<16x32xf32, #tpu.memory_space<vmem>>) attributes {dimension_semantics = [#tpu.dimension_semantics<arbitrary>], iteration_bounds = array<i64: 4>, scalar_prefetch = 0 : i64, scratch_operands = 0 : i64, tpu.core_type = #tpu.core_type<tc>, window_params = [{pipeline_mode = #tpu.pipeline_mode<synchronous>, transform_indices = @transform_0, window_bounds = array<i64: 16, 16>}, {pipeline_mode = #tpu.pipeline_mode<synchronous>, transform_indices = @transform_1, window_bounds = array<i64: 16, 32>}, {pipeline_mode = #tpu.pipeline_mode<synchronous>, transform_indices = @transform_2, window_bounds = array<i64: 16, 32>}, {transform_indices = @transform_3, window_bounds = array<i64: 1, 32, 32>}, {transform_indices = @transform_4, window_bounds = array<i64: 1, 32, 4>}, {transform_indices = @transform_5, window_bounds = array<i64: 1, 256, 64>}, {transform_indices = @transform_6, window_bounds = array<i64: 1, 32, 32>}, {transform_indices = @transform_7, window_bounds = array<i64: 1, 32, 128>}, {transform_indices = @transform_8, window_bounds = array<i64: 1, 1, 128>}, {transform_indices = @transform_9, window_bounds = array<i64: 1, 128, 32>}, {transform_indices = @transform_10, window_bounds = array<i64: 1, 6, 32>}, {pipeline_mode = #tpu.pipeline_mode<synchronous>, transform_indices = @transform_11, window_bounds = array<i64: 16, 32>}]} {
    %c0_i32 = arith.constant 0 : i32
    %0 = arith.cmpi eq, %arg0, %c0_i32 : i32
    %1 = arith.extui %0 : i1 to i32
    %c0_i32_0 = arith.constant 0 : i32
    %2 = arith.cmpi ne, %1, %c0_i32_0 : i32
    scf.if %2 {
      %c0_92 = arith.constant 0 : index
      %c0_93 = arith.constant 0 : index
      %250 = vector.load %arg1[%c0_92, %c0_93] : memref<16x16xbf16, #tpu.memory_space<vmem>>, vector<16x16xbf16>
      %c0_94 = arith.constant 0 : index
      %c0_95 = arith.constant 0 : index
      %251 = vector.load %arg2[%c0_94, %c0_95] : memref<16x32xbf16, #tpu.memory_space<vmem>>, vector<16x32xbf16>
      %cst_96 = arith.constant dense<0.000000e+00> : vector<16x32xf32>
      %252 = tpu.matmul %250, %251, %cst_96 {dimension_numbers = #tpu.dot_dimension_numbers<[1], [0], [0], [1], [0, 0, 1, 1], [], []>} : vector<16x16xbf16>, vector<16x32xbf16>, vector<16x32xf32> -> vector<16x32xf32>
      %c0_97 = arith.constant 0 : index
      %c0_98 = arith.constant 0 : index
      %253 = vector.load %arg3[%c0_97, %c0_98] : memref<16x32xf32, #tpu.memory_space<vmem>>, vector<16x32xf32>
      %254 = arith.addf %252, %253 : vector<16x32xf32>
      %c0_99 = arith.constant 0 : index
      %c0_100 = arith.constant 0 : index
      %255 = vector.load %arg12[%c0_99, %c0_100] : memref<16x32xf32, #tpu.memory_space<vmem>>, vector<16x32xf32>
      tpu.vector_store %arg12[%c0_99, %c0_100], %254 {strides = array<i32>} : memref<16x32xf32, #tpu.memory_space<vmem>>, vector<16x32xf32>,
    } else {
    }
    %c0 = arith.constant 0 : index
    %c0_1 = arith.constant 0 : index
    %3 = vector.load %arg12[%c0, %c0_1] : memref<16x32xf32, #tpu.memory_space<vmem>>, vector<16x32xf32>
    %c0_2 = arith.constant 0 : index
    %c0_3 = arith.constant 0 : index
    %c0_4 = arith.constant 0 : index
    %4 = vector.load %arg11[%c0_2, %c0_3, %c0_4] : memref<1x6x32xf32, #tpu.memory_space<vmem>>, vector<1x6x32xf32>
    %5 = vector.shape_cast %4 : vector<1x6x32xf32> to vector<6x32xf32>
    %6 = vector.extract_strided_slice %5 {offsets = [0, 0], sizes = [1, 32], strides = [1, 1]} : vector<6x32xf32> to vector<1x32xf32>
    %7 = vector.extract_strided_slice %5 {offsets = [1, 0], sizes = [1, 32], strides = [1, 1]} : vector<6x32xf32> to vector<1x32xf32>
    %8 = vector.extract_strided_slice %5 {offsets = [2, 0], sizes = [1, 32], strides = [1, 1]} : vector<6x32xf32> to vector<1x32xf32>
    %9 = vector.extract_strided_slice %5 {offsets = [3, 0], sizes = [1, 32], strides = [1, 1]} : vector<6x32xf32> to vector<1x32xf32>
    %10 = vector.extract_strided_slice %5 {offsets = [4, 0], sizes = [1, 32], strides = [1, 1]} : vector<6x32xf32> to vector<1x32xf32>
    %11 = vector.extract_strided_slice %5 {offsets = [5, 0], sizes = [1, 32], strides = [1, 1]} : vector<6x32xf32> to vector<1x32xf32>
    %cst = arith.constant dense<0.000000e+00> : vector<16xf32>
    %12 = vector.multi_reduction <add>, %3, %cst [1] : vector<16x32xf32> to vector<16xf32>
    %13 = vector.shape_cast %12 : vector<16xf32> to vector<16x1xf32>
    %cst_5 = arith.constant 3.200000e+01 : f32
    %14 = vector.broadcast %cst_5 : f32 to vector<16x1xf32>
    %15 = arith.divf %13, %14 : vector<16x1xf32>
    %16 = vector.broadcast %15 : vector<16x1xf32> to vector<16x32xf32>
    %17 = arith.subf %3, %16 : vector<16x32xf32>
    %18 = arith.mulf %17, %17 : vector<16x32xf32>
    %cst_6 = arith.constant dense<0.000000e+00> : vector<16xf32>
    %19 = vector.multi_reduction <add>, %18, %cst_6 [1] : vector<16x32xf32> to vector<16xf32>
    %20 = vector.shape_cast %19 : vector<16xf32> to vector<16x1xf32>
    %cst_7 = arith.constant 3.200000e+01 : f32
    %21 = vector.broadcast %cst_7 : f32 to vector<16x1xf32>
    %22 = arith.divf %20, %21 : vector<16x1xf32>
    %cst_8 = arith.constant 9.99999974E-6 : f32
    %23 = vector.broadcast %cst_8 : f32 to vector<16x1xf32>
    %24 = arith.addf %22, %23 : vector<16x1xf32>
    %25 = math.rsqrt %24 : vector<16x1xf32>
    %26 = vector.broadcast %25 : vector<16x1xf32> to vector<16x32xf32>
    %27 = arith.mulf %17, %26 : vector<16x32xf32>
    %28 = vector.broadcast %6 : vector<1x32xf32> to vector<16x32xf32>
    %29 = arith.mulf %27, %28 : vector<16x32xf32>
    %30 = vector.broadcast %7 : vector<1x32xf32> to vector<16x32xf32>
    %31 = arith.addf %29, %30 : vector<16x32xf32>
    %32 = arith.truncf %31 : vector<16x32xf32> to vector<16x32xbf16>
    %c0_9 = arith.constant 0 : index
    %c0_10 = arith.constant 0 : index
    %c0_11 = arith.constant 0 : index
    %33 = vector.load %arg4[%c0_9, %c0_10, %c0_11] : memref<1x32x32xbf16, #tpu.memory_space<vmem>>, vector<1x32x32xbf16>
    %34 = vector.shape_cast %33 : vector<1x32x32xbf16> to vector<32x32xbf16>
    %cst_12 = arith.constant dense<0.000000e+00> : vector<16x32xf32>
    %35 = tpu.matmul %32, %34, %cst_12 {dimension_numbers = #tpu.dot_dimension_numbers<[1], [0], [0], [1], [0, 0, 1, 1], [], []>} : vector<16x32xbf16>, vector<32x32xbf16>, vector<16x32xf32> -> vector<16x32xf32>
    %cst_13 = arith.constant 5.000000e-01 : f32
    %36 = vector.broadcast %cst_13 : f32 to vector<16x32xf32>
    %37 = arith.mulf %35, %36 : vector<16x32xf32>
    %c0_14 = arith.constant 0 : index
    %c0_15 = arith.constant 0 : index
    %c0_16 = arith.constant 0 : index
    %38 = vector.load %arg5[%c0_14, %c0_15, %c0_16] : memref<1x32x4xbf16, #tpu.memory_space<vmem>>, vector<1x32x4xbf16>
    %39 = vector.shape_cast %38 : vector<1x32x4xbf16> to vector<32x4xbf16>
    %cst_17 = arith.constant dense<0.000000e+00> : vector<16x4xf32>
    %40 = tpu.matmul %32, %39, %cst_17 {dimension_numbers = #tpu.dot_dimension_numbers<[1], [0], [0], [1], [0, 0, 1, 1], [], []>} : vector<16x32xbf16>, vector<32x4xbf16>, vector<16x4xf32> -> vector<16x4xf32>
    %41 = tpu.iota {dimensions = array<i32: 0>} : vector<16x1xi32>
    %c12_i32 = arith.constant 12 : i32
    %42 = vector.broadcast %c12_i32 : i32 to vector<16x1xi32>
    %43 = arith.cmpi slt, %41, %42 : vector<16x1xi32>
    %cst_18 = arith.constant 0.000000e+00 : f32
    %44 = vector.shape_cast %43 : vector<16x1xi1> to vector<16x1xi1>
    %45 = vector.broadcast %44 : vector<16x1xi1> to vector<16x4xi1>
    %46 = vector.broadcast %cst_18 : f32 to vector<16x4xf32>
    %47 = arith.select %45, %40, %46 : vector<16x4xi1>, vector<16x4xf32>
    %48 = arith.truncf %47 : vector<16x4xf32> to vector<16x4xbf16>
    %c0_19 = arith.constant 0 : index
    %c0_20 = arith.constant 0 : index
    %c0_21 = arith.constant 0 : index
    %49 = vector.load %arg6[%c0_19, %c0_20, %c0_21] : memref<1x256x64xbf16, #tpu.memory_space<vmem>>, vector<1x256x16xbf16>
    %50 = vector.shape_cast %49 : vector<1x256x16xbf16> to vector<256x16xbf16>
    %cst_22 = arith.constant dense<0.000000e+00> : vector<256x4xf32>
    %51 = tpu.matmul %50, %48, %cst_22 {dimension_numbers = #tpu.dot_dimension_numbers<[1], [0], [0], [1], [0, 0, 1, 1], [], []>} : vector<256x16xbf16>, vector<16x4xbf16>, vector<256x4xf32> -> vector<256x4xf32>
    %52 = arith.truncf %51 : vector<256x4xf32> to vector<256x4xbf16>
    %53 = arith.truncf %37 : vector<16x32xf32> to vector<16x32xbf16>
    %54 = vector.extract_strided_slice %53 {offsets = [0, 0], sizes = [16, 4], strides = [1, 1]} : vector<16x32xbf16> to vector<16x4xbf16>
    %cst_23 = arith.constant dense<0.000000e+00> : vector<16x256xf32>
    %55 = tpu.matmul %54, %52, %cst_23 {dimension_numbers = #tpu.dot_dimension_numbers<[1], [1], [0], [0], [0, 0, 1, 0], [], []>} : vector<16x4xbf16>, vector<256x4xbf16>, vector<16x256xf32> -> vector<16x256xf32>
    %cst_24 = arith.constant dense<0xFF800000> : vector<16xf32>
    %56 = vector.multi_reduction <maximumf>, %55, %cst_24 [1] : vector<16x256xf32> to vector<16xf32>
    %57 = vector.shape_cast %56 : vector<16xf32> to vector<16x1xf32>
    %58 = vector.broadcast %57 : vector<16x1xf32> to vector<16x256xf32>
    %59 = arith.subf %55, %58 : vector<16x256xf32>
    %60 = math.exp %59 : vector<16x256xf32>
    %cst_25 = arith.constant dense<0.000000e+00> : vector<16xf32>
    %61 = vector.multi_reduction <add>, %60, %cst_25 [1] : vector<16x256xf32> to vector<16xf32>
    %62 = vector.shape_cast %61 : vector<16xf32> to vector<16x1xf32>
    %63 = tpu.reciprocal %62 {approx = true} : vector<16x1xf32> -> vector<16x1xf32>
    %64 = vector.broadcast %63 : vector<16x1xf32> to vector<16x256xf32>
    %65 = arith.mulf %60, %64 : vector<16x256xf32>
    %66 = arith.truncf %65 : vector<16x256xf32> to vector<16x256xbf16>
    %cst_26 = arith.constant dense<0.000000e+00> : vector<16x4xf32>
    %67 = tpu.matmul %66, %52, %cst_26 {dimension_numbers = #tpu.dot_dimension_numbers<[1], [0], [0], [1], [0, 0, 1, 1], [], []>} : vector<16x256xbf16>, vector<256x4xbf16>, vector<16x4xf32> -> vector<16x4xf32>
    %68 = vector.extract_strided_slice %53 {offsets = [0, 4], sizes = [16, 4], strides = [1, 1]} : vector<16x32xbf16> to vector<16x4xbf16>
    %cst_27 = arith.constant dense<0.000000e+00> : vector<16x256xf32>
    %69 = tpu.matmul %68, %52, %cst_27 {dimension_numbers = #tpu.dot_dimension_numbers<[1], [1], [0], [0], [0, 0, 1, 0], [], []>} : vector<16x4xbf16>, vector<256x4xbf16>, vector<16x256xf32> -> vector<16x256xf32>
    %cst_28 = arith.constant dense<0xFF800000> : vector<16xf32>
    %70 = vector.multi_reduction <maximumf>, %69, %cst_28 [1] : vector<16x256xf32> to vector<16xf32>
    %71 = vector.shape_cast %70 : vector<16xf32> to vector<16x1xf32>
    %72 = vector.broadcast %71 : vector<16x1xf32> to vector<16x256xf32>
    %73 = arith.subf %69, %72 : vector<16x256xf32>
    %74 = math.exp %73 : vector<16x256xf32>
    %cst_29 = arith.constant dense<0.000000e+00> : vector<16xf32>
    %75 = vector.multi_reduction <add>, %74, %cst_29 [1] : vector<16x256xf32> to vector<16xf32>
    %76 = vector.shape_cast %75 : vector<16xf32> to vector<16x1xf32>
    %77 = tpu.reciprocal %76 {approx = true} : vector<16x1xf32> -> vector<16x1xf32>
    %78 = vector.broadcast %77 : vector<16x1xf32> to vector<16x256xf32>
    %79 = arith.mulf %74, %78 : vector<16x256xf32>
    %80 = arith.truncf %79 : vector<16x256xf32> to vector<16x256xbf16>
    %cst_30 = arith.constant dense<0.000000e+00> : vector<16x4xf32>
    %81 = tpu.matmul %80, %52, %cst_30 {dimension_numbers = #tpu.dot_dimension_numbers<[1], [0], [0], [1], [0, 0, 1, 1], [], []>} : vector<16x256xbf16>, vector<256x4xbf16>, vector<16x4xf32> -> vector<16x4xf32>
    %82 = vector.extract_strided_slice %53 {offsets = [0, 8], sizes = [16, 4], strides = [1, 1]} : vector<16x32xbf16> to vector<16x4xbf16>
    %cst_31 = arith.constant dense<0.000000e+00> : vector<16x256xf32>
    %83 = tpu.matmul %82, %52, %cst_31 {dimension_numbers = #tpu.dot_dimension_numbers<[1], [1], [0], [0], [0, 0, 1, 0], [], []>} : vector<16x4xbf16>, vector<256x4xbf16>, vector<16x256xf32> -> vector<16x256xf32>
    %cst_32 = arith.constant dense<0xFF800000> : vector<16xf32>
    %84 = vector.multi_reduction <maximumf>, %83, %cst_32 [1] : vector<16x256xf32> to vector<16xf32>
    %85 = vector.shape_cast %84 : vector<16xf32> to vector<16x1xf32>
    %86 = vector.broadcast %85 : vector<16x1xf32> to vector<16x256xf32>
    %87 = arith.subf %83, %86 : vector<16x256xf32>
    %88 = math.exp %87 : vector<16x256xf32>
    %cst_33 = arith.constant dense<0.000000e+00> : vector<16xf32>
    %89 = vector.multi_reduction <add>, %88, %cst_33 [1] : vector<16x256xf32> to vector<16xf32>
    %90 = vector.shape_cast %89 : vector<16xf32> to vector<16x1xf32>
    %91 = tpu.reciprocal %90 {approx = true} : vector<16x1xf32> -> vector<16x1xf32>
    %92 = vector.broadcast %91 : vector<16x1xf32> to vector<16x256xf32>
    %93 = arith.mulf %88, %92 : vector<16x256xf32>
    %94 = arith.truncf %93 : vector<16x256xf32> to vector<16x256xbf16>
    %cst_34 = arith.constant dense<0.000000e+00> : vector<16x4xf32>
    %95 = tpu.matmul %94, %52, %cst_34 {dimension_numbers = #tpu.dot_dimension_numbers<[1], [0], [0], [1], [0, 0, 1, 1], [], []>} : vector<16x256xbf16>, vector<256x4xbf16>, vector<16x4xf32> -> vector<16x4xf32>
    %96 = vector.extract_strided_slice %53 {offsets = [0, 12], sizes = [16, 4], strides = [1, 1]} : vector<16x32xbf16> to vector<16x4xbf16>
    %cst_35 = arith.constant dense<0.000000e+00> : vector<16x256xf32>
    %97 = tpu.matmul %96, %52, %cst_35 {dimension_numbers = #tpu.dot_dimension_numbers<[1], [1], [0], [0], [0, 0, 1, 0], [], []>} : vector<16x4xbf16>, vector<256x4xbf16>, vector<16x256xf32> -> vector<16x256xf32>
    %cst_36 = arith.constant dense<0xFF800000> : vector<16xf32>
    %98 = vector.multi_reduction <maximumf>, %97, %cst_36 [1] : vector<16x256xf32> to vector<16xf32>
    %99 = vector.shape_cast %98 : vector<16xf32> to vector<16x1xf32>
    %100 = vector.broadcast %99 : vector<16x1xf32> to vector<16x256xf32>
    %101 = arith.subf %97, %100 : vector<16x256xf32>
    %102 = math.exp %101 : vector<16x256xf32>
    %cst_37 = arith.constant dense<0.000000e+00> : vector<16xf32>
    %103 = vector.multi_reduction <add>, %102, %cst_37 [1] : vector<16x256xf32> to vector<16xf32>
    %104 = vector.shape_cast %103 : vector<16xf32> to vector<16x1xf32>
    %105 = tpu.reciprocal %104 {approx = true} : vector<16x1xf32> -> vector<16x1xf32>
    %106 = vector.broadcast %105 : vector<16x1xf32> to vector<16x256xf32>
    %107 = arith.mulf %102, %106 : vector<16x256xf32>
    %108 = arith.truncf %107 : vector<16x256xf32> to vector<16x256xbf16>
    %cst_38 = arith.constant dense<0.000000e+00> : vector<16x4xf32>
    %109 = tpu.matmul %108, %52, %cst_38 {dimension_numbers = #tpu.dot_dimension_numbers<[1], [0], [0], [1], [0, 0, 1, 1], [], []>} : vector<16x256xbf16>, vector<256x4xbf16>, vector<16x4xf32> -> vector<16x4xf32>
    %110 = vector.extract_strided_slice %53 {offsets = [0, 16], sizes = [16, 4], strides = [1, 1]} : vector<16x32xbf16> to vector<16x4xbf16>
    %cst_39 = arith.constant dense<0.000000e+00> : vector<16x256xf32>
    %111 = tpu.matmul %110, %52, %cst_39 {dimension_numbers = #tpu.dot_dimension_numbers<[1], [1], [0], [0], [0, 0, 1, 0], [], []>} : vector<16x4xbf16>, vector<256x4xbf16>, vector<16x256xf32> -> vector<16x256xf32>
    %cst_40 = arith.constant dense<0xFF800000> : vector<16xf32>
    %112 = vector.multi_reduction <maximumf>, %111, %cst_40 [1] : vector<16x256xf32> to vector<16xf32>
    %113 = vector.shape_cast %112 : vector<16xf32> to vector<16x1xf32>
    %114 = vector.broadcast %113 : vector<16x1xf32> to vector<16x256xf32>
    %115 = arith.subf %111, %114 : vector<16x256xf32>
    %116 = math.exp %115 : vector<16x256xf32>
    %cst_41 = arith.constant dense<0.000000e+00> : vector<16xf32>
    %117 = vector.multi_reduction <add>, %116, %cst_41 [1] : vector<16x256xf32> to vector<16xf32>
    %118 = vector.shape_cast %117 : vector<16xf32> to vector<16x1xf32>
    %119 = tpu.reciprocal %118 {approx = true} : vector<16x1xf32> -> vector<16x1xf32>
    %120 = vector.broadcast %119 : vector<16x1xf32> to vector<16x256xf32>
    %121 = arith.mulf %116, %120 : vector<16x256xf32>
    %122 = arith.truncf %121 : vector<16x256xf32> to vector<16x256xbf16>
    %cst_42 = arith.constant dense<0.000000e+00> : vector<16x4xf32>
    %123 = tpu.matmul %122, %52, %cst_42 {dimension_numbers = #tpu.dot_dimension_numbers<[1], [0], [0], [1], [0, 0, 1, 1], [], []>} : vector<16x256xbf16>, vector<256x4xbf16>, vector<16x4xf32> -> vector<16x4xf32>
    %124 = vector.extract_strided_slice %53 {offsets = [0, 20], sizes = [16, 4], strides = [1, 1]} : vector<16x32xbf16> to vector<16x4xbf16>
    %cst_43 = arith.constant dense<0.000000e+00> : vector<16x256xf32>
    %125 = tpu.matmul %124, %52, %cst_43 {dimension_numbers = #tpu.dot_dimension_numbers<[1], [1], [0], [0], [0, 0, 1, 0], [], []>} : vector<16x4xbf16>, vector<256x4xbf16>, vector<16x256xf32> -> vector<16x256xf32>
    %cst_44 = arith.constant dense<0xFF800000> : vector<16xf32>
    %126 = vector.multi_reduction <maximumf>, %125, %cst_44 [1] : vector<16x256xf32> to vector<16xf32>
    %127 = vector.shape_cast %126 : vector<16xf32> to vector<16x1xf32>
    %128 = vector.broadcast %127 : vector<16x1xf32> to vector<16x256xf32>
    %129 = arith.subf %125, %128 : vector<16x256xf32>
    %130 = math.exp %129 : vector<16x256xf32>
    %cst_45 = arith.constant dense<0.000000e+00> : vector<16xf32>
    %131 = vector.multi_reduction <add>, %130, %cst_45 [1] : vector<16x256xf32> to vector<16xf32>
    %132 = vector.shape_cast %131 : vector<16xf32> to vector<16x1xf32>
    %133 = tpu.reciprocal %132 {approx = true} : vector<16x1xf32> -> vector<16x1xf32>
    %134 = vector.broadcast %133 : vector<16x1xf32> to vector<16x256xf32>
    %135 = arith.mulf %130, %134 : vector<16x256xf32>
    %136 = arith.truncf %135 : vector<16x256xf32> to vector<16x256xbf16>
    %cst_46 = arith.constant dense<0.000000e+00> : vector<16x4xf32>
    %137 = tpu.matmul %136, %52, %cst_46 {dimension_numbers = #tpu.dot_dimension_numbers<[1], [0], [0], [1], [0, 0, 1, 1], [], []>} : vector<16x256xbf16>, vector<256x4xbf16>, vector<16x4xf32> -> vector<16x4xf32>
    %138 = vector.extract_strided_slice %53 {offsets = [0, 24], sizes = [16, 4], strides = [1, 1]} : vector<16x32xbf16> to vector<16x4xbf16>
    %cst_47 = arith.constant dense<0.000000e+00> : vector<16x256xf32>
    %139 = tpu.matmul %138, %52, %cst_47 {dimension_numbers = #tpu.dot_dimension_numbers<[1], [1], [0], [0], [0, 0, 1, 0], [], []>} : vector<16x4xbf16>, vector<256x4xbf16>, vector<16x256xf32> -> vector<16x256xf32>
    %cst_48 = arith.constant dense<0xFF800000> : vector<16xf32>
    %140 = vector.multi_reduction <maximumf>, %139, %cst_48 [1] : vector<16x256xf32> to vector<16xf32>
    %141 = vector.shape_cast %140 : vector<16xf32> to vector<16x1xf32>
    %142 = vector.broadcast %141 : vector<16x1xf32> to vector<16x256xf32>
    %143 = arith.subf %139, %142 : vector<16x256xf32>
    %144 = math.exp %143 : vector<16x256xf32>
    %cst_49 = arith.constant dense<0.000000e+00> : vector<16xf32>
    %145 = vector.multi_reduction <add>, %144, %cst_49 [1] : vector<16x256xf32> to vector<16xf32>
    %146 = vector.shape_cast %145 : vector<16xf32> to vector<16x1xf32>
    %147 = tpu.reciprocal %146 {approx = true} : vector<16x1xf32> -> vector<16x1xf32>
    %148 = vector.broadcast %147 : vector<16x1xf32> to vector<16x256xf32>
    %149 = arith.mulf %144, %148 : vector<16x256xf32>
    %150 = arith.truncf %149 : vector<16x256xf32> to vector<16x256xbf16>
    %cst_50 = arith.constant dense<0.000000e+00> : vector<16x4xf32>
    %151 = tpu.matmul %150, %52, %cst_50 {dimension_numbers = #tpu.dot_dimension_numbers<[1], [0], [0], [1], [0, 0, 1, 1], [], []>} : vector<16x256xbf16>, vector<256x4xbf16>, vector<16x4xf32> -> vector<16x4xf32>
    %152 = vector.extract_strided_slice %53 {offsets = [0, 28], sizes = [16, 4], strides = [1, 1]} : vector<16x32xbf16> to vector<16x4xbf16>
    %cst_51 = arith.constant dense<0.000000e+00> : vector<16x256xf32>
    %153 = tpu.matmul %152, %52, %cst_51 {dimension_numbers = #tpu.dot_dimension_numbers<[1], [1], [0], [0], [0, 0, 1, 0], [], []>} : vector<16x4xbf16>, vector<256x4xbf16>, vector<16x256xf32> -> vector<16x256xf32>
    %cst_52 = arith.constant dense<0xFF800000> : vector<16xf32>
    %154 = vector.multi_reduction <maximumf>, %153, %cst_52 [1] : vector<16x256xf32> to vector<16xf32>
    %155 = vector.shape_cast %154 : vector<16xf32> to vector<16x1xf32>
    %156 = vector.broadcast %155 : vector<16x1xf32> to vector<16x256xf32>
    %157 = arith.subf %153, %156 : vector<16x256xf32>
    %158 = math.exp %157 : vector<16x256xf32>
    %cst_53 = arith.constant dense<0.000000e+00> : vector<16xf32>
    %159 = vector.multi_reduction <add>, %158, %cst_53 [1] : vector<16x256xf32> to vector<16xf32>
    %160 = vector.shape_cast %159 : vector<16xf32> to vector<16x1xf32>
    %161 = tpu.reciprocal %160 {approx = true} : vector<16x1xf32> -> vector<16x1xf32>
    %162 = vector.broadcast %161 : vector<16x1xf32> to vector<16x256xf32>
    %163 = arith.mulf %158, %162 : vector<16x256xf32>
    %164 = arith.truncf %163 : vector<16x256xf32> to vector<16x256xbf16>
    %cst_54 = arith.constant dense<0.000000e+00> : vector<16x4xf32>
    %165 = tpu.matmul %164, %52, %cst_54 {dimension_numbers = #tpu.dot_dimension_numbers<[1], [0], [0], [1], [0, 0, 1, 1], [], []>} : vector<16x256xbf16>, vector<256x4xbf16>, vector<16x4xf32> -> vector<16x4xf32>
    %166 = tpu.concatenate %67, %81, %95, %109, %123, %137, %151, %165 in 1 : vector<16x4xf32>, vector<16x4xf32>, vector<16x4xf32>, vector<16x4xf32>, vector<16x4xf32>, vector<16x4xf32>, vector<16x4xf32>, vector<16x4xf32> -> vector<16x32xf32>
    %167 = arith.truncf %166 : vector<16x32xf32> to vector<16x32xbf16>
    %c0_55 = arith.constant 0 : index
    %c0_56 = arith.constant 0 : index
    %c0_57 = arith.constant 0 : index
    %168 = vector.load %arg7[%c0_55, %c0_56, %c0_57] : memref<1x32x32xbf16, #tpu.memory_space<vmem>>, vector<1x32x32xbf16>
    %169 = vector.shape_cast %168 : vector<1x32x32xbf16> to vector<32x32xbf16>
    %cst_58 = arith.constant dense<0.000000e+00> : vector<16x32xf32>
    %170 = tpu.matmul %167, %169, %cst_58 {dimension_numbers = #tpu.dot_dimension_numbers<[1], [0], [0], [1], [0, 0, 1, 1], [], []>} : vector<16x32xbf16>, vector<32x32xbf16>, vector<16x32xf32> -> vector<16x32xf32>
    %171 = arith.addf %3, %170 : vector<16x32xf32>
    %172 = vector.broadcast %10 : vector<1x32xf32> to vector<16x32xf32>
    %173 = arith.addf %171, %172 : vector<16x32xf32>
    %cst_59 = arith.constant dense<0.000000e+00> : vector<16xf32>
    %174 = vector.multi_reduction <add>, %173, %cst_59 [1] : vector<16x32xf32> to vector<16xf32>
    %175 = vector.shape_cast %174 : vector<16xf32> to vector<16x1xf32>
    %cst_60 = arith.constant 3.200000e+01 : f32
    %176 = vector.broadcast %cst_60 : f32 to vector<16x1xf32>
    %177 = arith.divf %175, %176 : vector<16x1xf32>
    %178 = vector.broadcast %177 : vector<16x1xf32> to vector<16x32xf32>
    %179 = arith.subf %173, %178 : vector<16x32xf32>
    %180 = arith.mulf %179, %179 : vector<16x32xf32>
    %cst_61 = arith.constant dense<0.000000e+00> : vector<16xf32>
    %181 = vector.multi_reduction <add>, %180, %cst_61 [1] : vector<16x32xf32> to vector<16xf32>
    %182 = vector.shape_cast %181 : vector<16xf32> to vector<16x1xf32>
    %cst_62 = arith.constant 3.200000e+01 : f32
    %183 = vector.broadcast %cst_62 : f32 to vector<16x1xf32>
    %184 = arith.divf %182, %183 : vector<16x1xf32>
    %cst_63 = arith.constant 9.99999974E-6 : f32
    %185 = vector.broadcast %cst_63 : f32 to vector<16x1xf32>
    %186 = arith.addf %184, %185 : vector<16x1xf32>
    %187 = math.rsqrt %186 : vector<16x1xf32>
    %188 = vector.broadcast %187 : vector<16x1xf32> to vector<16x32xf32>
    %189 = arith.mulf %179, %188 : vector<16x32xf32>
    %190 = vector.broadcast %8 : vector<1x32xf32> to vector<16x32xf32>
    %191 = arith.mulf %189, %190 : vector<16x32xf32>
    %192 = vector.broadcast %9 : vector<1x32xf32> to vector<16x32xf32>
    %193 = arith.addf %191, %192 : vector<16x32xf32>
    %194 = arith.truncf %193 : vector<16x32xf32> to vector<16x32xbf16>
    %c0_64 = arith.constant 0 : index
    %c0_65 = arith.constant 0 : index
    %c0_66 = arith.constant 0 : index
    %195 = vector.load %arg8[%c0_64, %c0_65, %c0_66] : memref<1x32x128xbf16, #tpu.memory_space<vmem>>, vector<1x32x128xbf16>
    %196 = vector.shape_cast %195 : vector<1x32x128xbf16> to vector<32x128xbf16>
    %cst_67 = arith.constant dense<0.000000e+00> : vector<16x128xf32>
    %197 = tpu.matmul %194, %196, %cst_67 {dimension_numbers = #tpu.dot_dimension_numbers<[1], [0], [0], [1], [0, 0, 1, 1], [], []>} : vector<16x32xbf16>, vector<32x128xbf16>, vector<16x128xf32> -> vector<16x128xf32>
    %c0_68 = arith.constant 0 : index
    %c0_69 = arith.constant 0 : index
    %c0_70 = arith.constant 0 : index
    %198 = vector.load %arg9[%c0_68, %c0_69, %c0_70] : memref<1x1x128xf32, #tpu.memory_space<vmem>>, vector<1x1x128xf32>
    %199 = vector.shape_cast %198 : vector<1x1x128xf32> to vector<1x128xf32>
    %200 = vector.broadcast %199 : vector<1x128xf32> to vector<16x128xf32>
    %201 = arith.addf %197, %200 : vector<16x128xf32>
    %cst_71 = arith.constant 5.000000e-01 : f32
    %202 = vector.broadcast %cst_71 : f32 to vector<16x128xf32>
    %203 = arith.mulf %202, %201 : vector<16x128xf32>
    %cst_72 = arith.constant 0.707106769 : f32
    %204 = vector.broadcast %cst_72 : f32 to vector<16x128xf32>
    %205 = arith.mulf %201, %204 : vector<16x128xf32>
    %206 = math.absf %205 : vector<16x128xf32>
    %cst_73 = arith.constant 0.327591091 : f32
    %207 = vector.broadcast %cst_73 : f32 to vector<16x128xf32>
    %208 = arith.mulf %207, %206 : vector<16x128xf32>
    %cst_74 = arith.constant 1.000000e+00 : f32
    %209 = vector.broadcast %cst_74 : f32 to vector<16x128xf32>
    %210 = arith.addf %209, %208 : vector<16x128xf32>
    %cst_75 = arith.constant 1.000000e+00 : f32
    %211 = vector.broadcast %cst_75 : f32 to vector<16x128xf32>
    %212 = arith.divf %211, %210 : vector<16x128xf32>
    %cst_76 = arith.constant 1.06140542 : f32
    %213 = vector.broadcast %cst_76 : f32 to vector<16x128xf32>
    %214 = arith.mulf %212, %213 : vector<16x128xf32>
    %cst_77 = arith.constant -1.45315206 : f32
    %215 = vector.broadcast %cst_77 : f32 to vector<16x128xf32>
    %216 = arith.addf %215, %214 : vector<16x128xf32>
    %217 = arith.mulf %212, %216 : vector<16x128xf32>
    %cst_78 = arith.constant 1.42141378 : f32
    %218 = vector.broadcast %cst_78 : f32 to vector<16x128xf32>
    %219 = arith.addf %218, %217 : vector<16x128xf32>
    %220 = arith.mulf %212, %219 : vector<16x128xf32>
    %cst_79 = arith.constant -0.284496725 : f32
    %221 = vector.broadcast %cst_79 : f32 to vector<16x128xf32>
    %222 = arith.addf %221, %220 : vector<16x128xf32>
    %223 = arith.mulf %212, %222 : vector<16x128xf32>
    %cst_80 = arith.constant 0.254829586 : f32
    %224 = vector.broadcast %cst_80 : f32 to vector<16x128xf32>
    %225 = arith.addf %224, %223 : vector<16x128xf32>
    %226 = arith.mulf %212, %225 : vector<16x128xf32>
    %cst_81 = arith.constant 0.000000e+00 : f32
    %227 = vector.broadcast %cst_81 : f32 to vector<16x128xf32>
    %228 = arith.subf %227, %205 : vector<16x128xf32>
    %229 = arith.mulf %228, %205 : vector<16x128xf32>
    %230 = math.exp %229 : vector<16x128xf32>
    %231 = arith.mulf %226, %230 : vector<16x128xf32>
    %cst_82 = arith.constant 1.000000e+00 : f32
    %232 = vector.broadcast %cst_82 : f32 to vector<16x128xf32>
    %233 = arith.subf %232, %231 : vector<16x128xf32>
    %cst_83 = arith.constant 0.000000e+00 : f32
    %234 = vector.broadcast %cst_83 : f32 to vector<16x128xf32>
    %235 = arith.cmpf oge, %205, %234 : vector<16x128xf32>
    %cst_84 = arith.constant 0.000000e+00 : f32
    %236 = vector.broadcast %cst_84 : f32 to vector<16x128xf32>
    %237 = arith.subf %236, %233 : vector<16x128xf32>
    %238 = arith.select %235, %233, %237 : vector<16x128xi1>, vector<16x128xf32>
    %cst_85 = arith.constant 1.000000e+00 : f32
    %239 = vector.broadcast %cst_85 : f32 to vector<16x128xf32>
    %240 = arith.addf %239, %238 : vector<16x128xf32>
    %241 = arith.mulf %203, %240 : vector<16x128xf32>
    %242 = arith.truncf %241 : vector<16x128xf32> to vector<16x128xbf16>
    %c0_86 = arith.constant 0 : index
    %c0_87 = arith.constant 0 : index
    %c0_88 = arith.constant 0 : index
    %243 = vector.load %arg10[%c0_86, %c0_87, %c0_88] : memref<1x128x32xbf16, #tpu.memory_space<vmem>>, vector<1x128x32xbf16>
    %244 = vector.shape_cast %243 : vector<1x128x32xbf16> to vector<128x32xbf16>
    %cst_89 = arith.constant dense<0.000000e+00> : vector<16x32xf32>
    %245 = tpu.matmul %242, %244, %cst_89 {dimension_numbers = #tpu.dot_dimension_numbers<[1], [0], [0], [1], [0, 0, 1, 1], [], []>} : vector<16x128xbf16>, vector<128x32xbf16>, vector<16x32xf32> -> vector<16x32xf32>
    %246 = vector.broadcast %11 : vector<1x32xf32> to vector<16x32xf32>
    %247 = arith.addf %245, %246 : vector<16x32xf32>
    %248 = arith.addf %173, %247 : vector<16x32xf32>
    %c0_90 = arith.constant 0 : index
    %c0_91 = arith.constant 0 : index
    %249 = vector.load %arg12[%c0_90, %c0_91] : memref<16x32xf32, #tpu.memory_space<vmem>>, vector<16x32xf32>
    tpu.vector_store %arg12[%c0_90, %c0_91], %248 {strides = array<i32>} : memref<16x32xf32, #tpu.memory_space<vmem>>, vector<16x32xf32>,
    return
  }
  func.func @transform_0(%arg0: i32) -> (i32, i32) {
    %c0_i32 = arith.constant 0 : i32
    %c0_i32_0 = arith.constant 0 : i32
    %c0_i32_1 = arith.constant 0 : i32
    return %c0_i32, %c0_i32_0 : i32, i32
  }
  func.func @transform_1(%arg0: i32) -> (i32, i32) {
    %c0_i32 = arith.constant 0 : i32
    %c0_i32_0 = arith.constant 0 : i32
    %c0_i32_1 = arith.constant 0 : i32
    return %c0_i32, %c0_i32_0 : i32, i32
  }
  func.func @transform_2(%arg0: i32) -> (i32, i32) {
    %c0_i32 = arith.constant 0 : i32
    %c0_i32_0 = arith.constant 0 : i32
    %c0_i32_1 = arith.constant 0 : i32
    return %c0_i32, %c0_i32_0 : i32, i32
  }
  func.func @transform_3(%arg0: i32) -> (i32, i32, i32) {
    %c0_i32 = arith.constant 0 : i32
    %c0_i32_0 = arith.constant 0 : i32
    %c0_i32_1 = arith.constant 0 : i32
    return %arg0, %c0_i32, %c0_i32_0 : i32, i32, i32
  }
  func.func @transform_4(%arg0: i32) -> (i32, i32, i32) {
    %c0_i32 = arith.constant 0 : i32
    %c0_i32_0 = arith.constant 0 : i32
    %c0_i32_1 = arith.constant 0 : i32
    return %arg0, %c0_i32, %c0_i32_0 : i32, i32, i32
  }
  func.func @transform_5(%arg0: i32) -> (i32, i32, i32) {
    %c0_i32 = arith.constant 0 : i32
    %c0_i32_0 = arith.constant 0 : i32
    %c0_i32_1 = arith.constant 0 : i32
    return %arg0, %c0_i32, %c0_i32_0 : i32, i32, i32
  }
  func.func @transform_6(%arg0: i32) -> (i32, i32, i32) {
    %c0_i32 = arith.constant 0 : i32
    %c0_i32_0 = arith.constant 0 : i32
    %c0_i32_1 = arith.constant 0 : i32
    return %arg0, %c0_i32, %c0_i32_0 : i32, i32, i32
  }
  func.func @transform_7(%arg0: i32) -> (i32, i32, i32) {
    %c0_i32 = arith.constant 0 : i32
    %c0_i32_0 = arith.constant 0 : i32
    %c0_i32_1 = arith.constant 0 : i32
    return %arg0, %c0_i32, %c0_i32_0 : i32, i32, i32
  }
  func.func @transform_8(%arg0: i32) -> (i32, i32, i32) {
    %c0_i32 = arith.constant 0 : i32
    %c0_i32_0 = arith.constant 0 : i32
    %c0_i32_1 = arith.constant 0 : i32
    return %arg0, %c0_i32, %c0_i32_0 : i32, i32, i32
  }
  func.func @transform_9(%arg0: i32) -> (i32, i32, i32) {
    %c0_i32 = arith.constant 0 : i32
    %c0_i32_0 = arith.constant 0 : i32
    %c0_i32_1 = arith.constant 0 : i32
    return %arg0, %c0_i32, %c0_i32_0 : i32, i32, i32
  }
  func.func @transform_10(%arg0: i32) -> (i32, i32, i32) {
    %c0_i32 = arith.constant 0 : i32
    %c0_i32_0 = arith.constant 0 : i32
    %c0_i32_1 = arith.constant 0 : i32
    return %arg0, %c0_i32, %c0_i32_0 : i32, i32, i32
  }
  func.func @transform_11(%arg0: i32) -> (i32, i32) {
    %c0_i32 = arith.constant 0 : i32
    %c0_i32_0 = arith.constant 0 : i32
    %c0_i32_1 = arith.constant 0 : i32
    return %c0_i32, %c0_i32_0 : i32, i32
  }
}

</mosaic_0001>

<bundles_post_ra>
// kernel: _encoder_forward_jit.1
= control target key start
LH: loop header
LB: loop body
LE: loop exit
PB: predicated region body
PF: predicated region fallthrough
CT: control target
= control target key end

     0   :  { %s2721_s17 = smov 0   ;;  %s3451_s0 = inlined_call_operand.vmem [shape: bf16[16,16], index: 0, kind: input, shape index: {}]   ;;  %s3452_s1 = inlined_call_operand.vmem [shape: bf16[16,32], index: 1, kind: input, shape index: {}]   ;;  %s3453_s2 = inlined_call_operand.vmem [shape: f32[16,32], index: 2, kind: input, shape index: {}]   ;;  %s3454_s3 = inlined_call_operand.vmem [shape: bf16[4,32,32], index: 3, kind: input, shape index: {}]   ;;  %s3455_s4 = inlined_call_operand.vmem [shape: bf16[4,32,4], index: 4, kind: input, shape index: {}]   ;;  %s3456_s5 = inlined_call_operand.vmem [shape: bf16[4,256,64], index: 5, kind: input, shape index: {}]   ;;  %s3457_s6 = inlined_call_operand.vmem [shape: bf16[4,32,32], index: 6, kind: input, shape index: {}]   ;;  %s3458_s7 = inlined_call_operand.vmem [shape: bf16[4,32,128], index: 7, kind: input, shape index: {}]   ;;  %s3459_s8 = inlined_call_operand.vmem [shape: f32[4,1,128], index: 8, kind: input, shape index: {}]   ;;  %s3460_s9 = inlined_call_operand.vmem [shape: bf16[4,128,32], index: 9, kind: input, shape index: {}]   ;;  %s3461_s10 = inlined_call_operand.vmem [shape: f32[4,6,32], index: 10, kind: input, shape index: {}]   ;;  %s3462_s11 = inlined_call_operand.vmem [shape: f32[16,32], index: 11, kind: output, shape index: {}]  }
   0x1   :  { %3464 = sst [smem:[#allocation3_spill]] %s3454_s3 }
   0x2   :  { %3465 = sst [smem:[#allocation4_spill]] %s3455_s4 }
   0x3 LB: > { %3466 = sst [smem:[#allocation2_spill]] %s2643_s17  ;;  %s2224_s18 = sadd.s32 4294967295, %s2643_s17   ;;  %s2643_s17 = sphi %s2721_s17, %s21_s17  }
   0x4   : > { %p2227_p0 = scmp.ge.s32.totalorder %s2643_s17, 1  ;;  %p399_p1 = scmp.lt.s32.totalorder %s2643_s17, 5 }
   0x6   : > { %p400_p2 = pnand %p2227_p0, %p399_p1 }
   0x7   : > { %p466_p3 = scmp.lt.s32.totalorder (!%p400_p2), %s2224_s18, 3  ;;  %s3467_s3 = sld [smem:[#allocation3_spill]] (!%p400_p2) }
   0x8   : > { %403 = sbr.rel (%p400_p2) target bundleno = 4345 (0x10f9), region = 64  ;;  %s3468_s4 = sld [smem:[#allocation4_spill]] (!%p400_p2) }
   0x9   : > { %p2241_p4 = scmp.ne.s32.totalorder (!%p400_p2), %s2224_s18, 0 }
   0xd   : > { %s2729_s19 = scalar_select %p466_p3, %s2224_s18, 3 }
   0xf   : > { %s2420_s20 = sshll.u32 %s2729_s19, 4  ;;  %s2422_s21 = sshll.u32 %s2729_s19, 7 }
  0x10   : > { %s2736_s24 = scalar_lea.vmem %s3467_s3, %s2420_s20  ;;  %s2741_s27 = scalar_lea.vmem %s3468_s4, %s2420_s20 }
  0x11   : > { %s2746_s30 = scalar_lea.vmem %s3456_s5, %s2422_s21  ;;  %s2751_s14 = scalar_lea.vmem %s3457_s6, %s2420_s20 }
  0x12   : > { %s2756_s22 = scalar_lea.vmem %s3458_s7, %s2420_s20  ;;  %s493_s25 = scalar_lea.vmem %s3459_s8, %s2729_s19 }
  0x13   : > { %s2425_s26 = sshll.u32 %s2729_s19, 6  ;;  %s2240_s4 = sshll.u32 %s2729_s19, 3 }
  0x14   : > { %s2767_s21 = scalar_lea.vmem %s3460_s9, %s2425_s26  ;;  %s2772_s13 = scalar_lea.vmem %s3461_s10, %s2240_s4 }
  0x15   : > { %507 = sbr.rel (%p2241_p4) target bundleno = 167 (0xa7), region = 68 }
  0x1a   : > { %v2427_v0 = vld [vmem:[%s3452_s1] sm:$0xff]  ;;  %vm525_vm0 = vcmask 130048   ;;  %vm543_vm1 = vcmask 261120   ;;  %v513_v5 = vld [vmem:[%s3453_s2 + $0x8] sm:$0xff] }
  0x1b   : > { %v2426_v1 = vld [vmem:[%s3451_s0] sm:$0xff]  ;;  %536 = vmatpush.bf16.msra.mxu0 %v2427_v0 }
  0x1c   : > { %v512_v2 = vld [vmem:[%s3453_s2] sm:$0xff] }
  0x1e   : > { %2250 = vmatmul.msk.bf16.vlgmr.msra.gmra.mxu0 %vm525_vm0, %v2426_v1 }
  0x9b   : > { %v538_v3 = vpop.f32.mrf.mxu0 }
  0x9c   : > { %v539_v4 = vadd.f32 %v538_v3, %v512_v2 }
  0x9e   : > { %544 = vst.msk [vmem:[%s3462_s11] sm:$0xff] %vm543_vm1, %v539_v4 }
  0xa3   : > { %v540_v6 = vpop.f32.mrf.mxu0 }
  0xa4   : > { %v541_v7 = vadd.f32 %v540_v6, %v513_v5 }
  0xa6   : > { %545 = vst.msk [vmem:[%s3462_s11 + $0x8] sm:$0xff] %vm543_vm1, %v541_v7 }
  0xa7 PF: > { %v546_v8 = vld [vmem:[%s3462_s11] sm:$0xff]  ;;  %vm549_vm2 = vcmask 261120   ;;  %v2645_v12 = vmov 32.0   ;;  %v2429_v29 = vld [vmem:[%s2736_s24 + $0x8] sm:$0xff]  ;;  %v673_v63 = vlaneseq  ;;  %vm2646_vm11 = vmmov 1   ;;  %s2649_s17 = smov 120  }
  0xa8   : > { %v550_v9 = vsel %vm549_vm2, %v546_v8, 0.0  ;;  %2520 = vrcp.f32 %v2645_v12  ;;  %v2431_v30 = vld [vmem:[%s2741_s27 + $0x8] sm:$0xff]  ;;  %633 = vmatpush.bf16.msra.mxu0 %v2429_v29  ;;  %v2428_v32 = vld [vmem:[%s2736_s24] sm:$0xff]  ;;  %vm797_vm13 = vcmask 130048   ;;  %s2647_s24 = smov 116   ;;  %vm958_vm14 = vcmask 31744  }
  0xa9   : > { %551 = vadd.xlane.f32.xlu0 %v550_v9  ;;  %665 = vmatpush.bf16.msra.mxu1 %v2431_v30  ;;  %v2430_v33 = vld [vmem:[%s2741_s27] sm:$0xff]  ;;  %v674_v0 = vshrl.u32 %v673_v63, 7  ;;  %s2648_s27 = smov 124   ;;  %s2651_s23 = smov 108   ;;  %vm1807_vm15 = vcmask 64512   ;;  %vm1810_vm0 = vcmask 97280  }
  0xaa   : > { %v548_v50 = vld [vmem:[%s2772_s13] sm:$0x3f]  ;;  %s2652_s4 = smov 104   ;;  %s2653_s18 = smov 100   ;;  %vm1815_vm1 = vcmask 162816  }
  0xab   : > { %v601_v53 = vperm.slane %v548_v50, 0  ;;  %v604_v58 = vperm.slane %v548_v50, 1  ;;  %v675_v3 = vadd.s32 8, %v674_v0  ;;  %s2654_s26 = smov 8   ;;  %s2655_s28 = smov 16  }
  0xac   : > { %634 = vmatpush.bf16.msra.mxu0 %v2428_v32  ;;  %s2656_s29 = smov 24   ;;  %s2657_s12 = smov 4  }
  0xad   : > { %v547_v10 = vld [vmem:[%s3462_s11 + $0x8] sm:$0xff]  ;;  %666 = vmatpush.bf16.msra.mxu1 %v2430_v33  ;;  %vm677_vm10 = vcmp.lt.s32.totalorder %v675_v3, 12  ;;  %s2658_s20 = smov 12   ;;  %s2659_s15 = smov 20  }
  0xae   : > { %v553_v11 = vsel %vm549_vm2, %v547_v10, 0.0  ;;  %v2521_v13 = vpop.eup %2520  ;;  %vm2333_vm12 = vmpackc.low %vm677_vm10, %vm2646_vm11  ;;  %s2660_s3 = smov 28  }
  0xaf   : > { %v557_v14 = vmul.f32 32.0, %v2521_v13  ;;  %vm561_vm3 = vweird.f32 %v2521_v13 }
  0xb1   : > { %554 = vadd.xlane.f32.xlu0 %v553_v11  ;;  %v558_v15 = vsub.f32 1.0, %v557_v14 }
  0xb3   : > { %v559_v16 = vmul.f32 %v2521_v13, %v558_v15  ;;  %v2433_v15 = vld [vmem:[%s2746_s30 + $0x8] sm:$0xff] }
  0xb5   : > { %v560_v17 = vadd.f32 %v2521_v13, %v559_v16  ;;  %v2434_v16 = vld [vmem:[%s2746_s30 + $0x10] sm:$0xff] }
  0xb7   : > { %v2800_v18 = vsel %vm561_vm3, %v2521_v13, %v560_v17  ;;  %v2435_v17 = vld [vmem:[%s2746_s30 + $0x18] sm:$0xff]  ;;  %vm1818_vm3 = vcmask 195584  }
 0x11c   : > { %v552_v19 = vpop.xlane.xlu0 %551 }
 0x11d   : > { %v563_v20 = vmul.f32 %v2800_v18, %v552_v19  ;;  %v2436_v19 = vld [vmem:[%s2746_s30 + $0x20] sm:$0xff] }
 0x11f   : > { %v565_v21 = vsub.f32 %v546_v8, %v563_v20  ;;  %v2437_v20 = vld [vmem:[%s2746_s30 + $0x28] sm:$0xff] }
 0x121   : > { %v567_v22 = vmul.f32 %v565_v21, %v565_v21 }
 0x123   : > { %v569_v23 = vsel %vm549_vm2, %v567_v22, 0.0  ;;  %v2439_v22 = vld [vmem:[%s2746_s30 + $0x38] sm:$0xff] }
 0x124   : > { %570 = vadd.xlane.f32.xlu1 %v569_v23  ;;  %v555_v24 = vpop.xlane.xlu0 %554  ;;  %v2440_v23 = vld [vmem:[%s2746_s30 + $0x40] sm:$0xff] }
 0x125   : > { %v564_v25 = vmul.f32 %v2800_v18, %v555_v24 }
 0x127   : > { %v566_v26 = vsub.f32 %v547_v10, %v564_v25  ;;  %v2432_v10 = vld [vmem:[%s2746_s30] sm:$0xff] }
 0x129   : > { %v568_v27 = vmul.f32 %v566_v26, %v566_v26 }
 0x12b   : > { %v572_v28 = vsel %vm549_vm2, %v568_v27, 0.0  ;;  %v2441_v27 = vld [vmem:[%s2746_s30 + $0x48] sm:$0xff] }
 0x12c   : > { %573 = vadd.xlane.f32.xlu1 %v572_v28 }
 0x197   : > { %v571_v31 = vpop.xlane.xlu1 %570 }
 0x198   : > { %v575_v34 = vmul.f32 %v571_v31, %v2800_v18  ;;  %v2442_v31 = vld [vmem:[%s2746_s30 + $0x50] sm:$0xff] }
 0x19a   : > { %v577_v35 = vadd.f32 1e-05, %v575_v34 }
 0x19c   : > { %2522 = vrsqrt.f32 %v577_v35  ;;  %vm585_vm5 = vweird.f32 %v577_v35 }
 0x19f   : > { %v574_v36 = vpop.xlane.xlu1 %573 }
 0x1a0   : > { %v576_v37 = vmul.f32 %v574_v36, %v2800_v18 }
 0x1a2   : > { %v2523_v38 = vpop.eup %2522  ;;  %v578_v39 = vadd.f32 1e-05, %v576_v37 }
 0x1a3   : > { %v580_v40 = vmul.f32 %v2523_v38, %v577_v35  ;;  %vm586_vm4 = vweird.f32 %v2523_v38  ;;  %v2443_v35 = vld [vmem:[%s2746_s30 + $0x58] sm:$0xff] }
 0x1a4   : > { %2524 = vrsqrt.f32 %v578_v39  ;;  %vm587_vm6 = vmor %vm585_vm5, %vm586_vm4  ;;  %vm595_vm8 = vweird.f32 %v578_v39  ;;  %vm1821_vm4 = vcmask 228352  }
 0x1a5   : > { %v581_v41 = vmul.f32 %v2523_v38, %v580_v40 }
 0x1a7   : > { %v582_v42 = vmul.f32 0.5, %v581_v41 }
 0x1a9   : > { %v583_v43 = vsub.f32 1.5, %v582_v42  ;;  %v2445_v42 = vld [vmem:[%s2746_s30 + $0x68] sm:$0xff] }
 0x1aa   : > { %v2525_v44 = vpop.eup %2524 }
 0x1ab   : > { %v584_v45 = vmul.f32 %v2523_v38, %v583_v43  ;;  %v590_v46 = vmul.f32 %v2525_v44, %v578_v39  ;;  %vm596_vm7 = vweird.f32 %v2525_v44  ;;  %v2444_v39 = vld [vmem:[%s2746_s30 + $0x60] sm:$0xff] }
 0x1ac   : > { %vm597_vm9 = vmor %vm595_vm8, %vm596_vm7 }
 0x1ad   : > { %v591_v47 = vmul.f32 %v2525_v44, %v590_v46  ;;  %v588_v48 = vsel %vm587_vm6, %v2523_v38, %v584_v45  ;;  %v2446_v45 = vld [vmem:[%s2746_s30 + $0x70] sm:$0xff] }
 0x1ae   : > { %v599_v52 = vmul.f32 %v588_v48, %v565_v21  ;;  %v2438_v21 = vld [vmem:[%s2746_s30 + $0x30] sm:$0xff]  ;;  %v2447_v48 = vld [vmem:[%s2746_s30 + $0x78] sm:$0xff]  ;;  %s2650_s30 = smov 112  }
 0x1af   : > { %v592_v49 = vmul.f32 0.5, %v591_v47 }
 0x1b0   : > { %v602_v57 = vmul.f32 %v601_v53, %v599_v52 }
 0x1b1   : > { %v593_v51 = vsub.f32 1.5, %v592_v49 }
 0x1b2   : > { %v605_v60 = vadd.f32 %v604_v58, %v602_v57 }
 0x1b3   : > { %v594_v54 = vmul.f32 %v2525_v44, %v593_v51 }
 0x1b5   : > { %v598_v55 = vsel %vm597_vm9, %v2525_v44, %v594_v54 }
 0x1b6   : > { %v600_v56 = vmul.f32 %v598_v55, %v566_v26 }
 0x1b8   : > { %v603_v59 = vmul.f32 %v601_v53, %v600_v56 }
 0x1ba   : > { %v606_v61 = vadd.f32 %v604_v58, %v603_v59 }
 0x1bc   : > { %v607_v62 = vpack.c.bf16 %v606_v61, %v605_v60 }
 0x1be   : > { %2259 = vmatmul.msk.bf16.vlgmr.msra.gmra.mxu0 %vm549_vm2, %v607_v62  ;;  %2268 = vmatmul.msk.bf16.vlgmr.msra.gmra.mxu1 %vm549_vm2, %v607_v62 }
 0x23b   : > { %v636_v1 = vpop.f32.mrf.mxu0  ;;  %v668_v2 = vpop.f32.mrf.mxu1 }
 0x23c   : > { %v641_v4 = vmul.f32 0.5, %v636_v1 }
 0x23e   : > { %v951_v7 = vpack.c.bf16 %v641_v4, %v641_v4 }
 0x240   : > { %v955_v12 = vunpack.c.l.b16 %v951_v7 }
 0x243   : > { %v638_v5 = vpop.f32.mrf.mxu0  ;;  %v670_v6 = vpop.f32.mrf.mxu1 }
 0x244   : > { %v642_v8 = vmul.f32 0.5, %v638_v5  ;;  %v2334_v9 = vpack.c.bf16 %v670_v6, %v668_v2 }
 0x246   : > { %v952_v11 = vpack.c.bf16 %v642_v8, %v642_v8  ;;  %2335 = vmatpush.bf16.msk.msra.mxu2 %vm2333_vm12, %v2334_v9 }
 0x248   : > { %v956_v13 = vunpack.c.l.b16 %v952_v11 }
 0x249   : > { %2336 = vmatmul.msk.bf16.vlgmr.msra.gmra.mxu2 %vm797_vm13, %v2432_v10 }
 0x24a   : > { %v2817_v14 = vpack.c.b16 %v956_v13, %v955_v12 }
 0x24c   : > { %1284 = vrot.lane.b32.xlu0 %v2817_v14, %s2647_s24  ;;  %1098 = vrot.lane.b32.xlu2 %v2817_v14, %s2648_s27 }
 0x254   : > { %1191 = vrot.lane.b32.xlu2 %v2817_v14, %s2649_s17 }
 0x259   : > { %2337 = vmatmul.msk.bf16.gmra.mxu2 %vm797_vm13, %v2433_v15 }
 0x269   : > { %2338 = vmatmul.msk.bf16.gmra.mxu2 %vm797_vm13, %v2434_v16 }
 0x279   : > { %2339 = vmatmul.msk.bf16.gmra.mxu2 %vm797_vm13, %v2435_v17 }
 0x289   : > { %2340 = vmatmul.msk.bf16.gmra.mxu2 %vm797_vm13, %v2436_v19 }
 0x299   : > { %2341 = vmatmul.msk.bf16.gmra.mxu2 %vm797_vm13, %v2437_v20 }
 0x2a6   : > { %v2937_v19 = vpop.permute.xlu2 %1098 }
 0x2a9   : > { %2342 = vmatmul.msk.bf16.gmra.mxu2 %vm797_vm13, %v2438_v21 }
 0x2b9   : > { %2343 = vmatmul.msk.bf16.gmra.mxu2 %vm797_vm13, %v2439_v22 }
 0x2c9   : > { %2344 = vmatmul.msk.bf16.gmra.mxu2 %vm797_vm13, %v2440_v23 }
 0x2cc   : > { %v855_v24 = vpop.f32.mrf.mxu2 }
 0x2d4   : > { %v857_v25 = vpop.f32.mrf.mxu2 }
 0x2d5   : > { %v2838_v26 = vpack.c.bf16 %v857_v25, %v855_v24 }
 0x2d7   : > { %v2921_v7 = vsel %vm958_vm14, %v2838_v26, 0 }
 0x2d9   : > { %2345 = vmatmul.msk.bf16.gmra.mxu2 %vm797_vm13, %v2441_v27 }
 0x2dc   : > { %v860_v28 = vpop.f32.mrf.mxu2 }
 0x2e4   : > { %v862_v29 = vpop.f32.mrf.mxu2 }
 0x2e5   : > { %v2842_v30 = vpack.c.bf16 %v862_v29, %v860_v28 }
 0x2e7   : > { %v2916_v5 = vsel %vm958_vm14, %v2842_v30, 0 }
 0x2e9   : > { %2346 = vmatmul.msk.bf16.gmra.mxu2 %vm797_vm13, %v2442_v31 }
 0x2ec   : > { %v865_v32 = vpop.f32.mrf.mxu2 }
 0x2f4   : > { %v867_v33 = vpop.f32.mrf.mxu2 }
 0x2f5   : > { %v2846_v34 = vpack.c.bf16 %v867_v33, %v865_v32 }
 0x2f7   : > { %v2909_v2 = vsel %vm958_vm14, %v2846_v34, 0 }
 0x2f9   : > { %2347 = vmatmul.msk.bf16.gmra.mxu2 %vm797_vm13, %v2443_v35 }
 0x2fc   : > { %v870_v36 = vpop.f32.mrf.mxu2 }
 0x304   : > { %v872_v37 = vpop.f32.mrf.mxu2 }
 0x305   : > { %v2850_v38 = vpack.c.bf16 %v872_v37, %v870_v36  ;;  %v3009_v36 = vpop.permute.xlu2 %1191 }
 0x307   : > { %v2904_v0 = vsel %vm958_vm14, %v2850_v38, 0 }
 0x309   : > { %2348 = vmatmul.msk.bf16.gmra.mxu2 %vm797_vm13, %v2444_v39  ;;  %v1285_v39 = vpop.permute.xlu0 %1284 }
 0x30c   : > { %v875_v40 = vpop.f32.mrf.mxu2 }
 0x314   : > { %v877_v41 = vpop.f32.mrf.mxu2 }
 0x315   : > { %v2881_v57 = vpack.c.bf16 %v877_v41, %v875_v40 }
 0x317   : > { %v2896_v61 = vsel %vm958_vm14, %v2881_v57, 0 }
 0x319   : > { %2349 = vmatmul.msk.bf16.gmra.mxu2 %vm797_vm13, %v2445_v42 }
 0x31c   : > { %v880_v43 = vpop.f32.mrf.mxu2 }
 0x324   : > { %v882_v44 = vpop.f32.mrf.mxu2 }
 0x325   : > { %v2873_v55 = vpack.c.bf16 %v882_v44, %v880_v43 }
 0x327   : > { %v2889_v59 = vsel %vm958_vm14, %v2873_v55, 0 }
 0x329   : > { %2350 = vmatmul.msk.bf16.gmra.mxu2 %vm797_vm13, %v2446_v45 }
 0x32c   : > { %v885_v46 = vpop.f32.mrf.mxu2 }
 0x334   : > { %v887_v47 = vpop.f32.mrf.mxu2 }
 0x335   : > { %v2868_v53 = vpack.c.bf16 %v887_v47, %v885_v46 }
 0x337   : > { %v2878_v56 = vsel %vm958_vm14, %v2868_v53, 0 }
 0x339   : > { %2351 = vmatmul.msk.bf16.gmra.mxu2 %vm797_vm13, %v2447_v48 }
 0x33c   : > { %v890_v49 = vpop.f32.mrf.mxu2 }
 0x344   : > { %v892_v50 = vpop.f32.mrf.mxu2 }
 0x345   : > { %v2860_v51 = vpack.c.bf16 %v892_v50, %v890_v49 }
 0x347   : > { %1070 = vmatpush.bf16.msrb.mxu1 %v2860_v51  ;;  %v2865_v52 = vsel %vm958_vm14, %v2860_v51, 0 }
 0x348   : > { %1010 = vmatpush.bf16.xpose.msra.mxu3 %v2865_v52 }
 0x34b   : > { %1071 = vmatpush.bf16.msrb.mxu1 %v2868_v53 }
 0x34c   : > { %v2871_v54 = vpop.f32.mrf.mxu2 }
 0x34f   : > { %1072 = vmatpush.bf16.msrb.mxu1 %v2873_v55 }
 0x350   : > { %1011 = vmatpush.bf16.xpose.msra.mxu3 %v2878_v56 }
 0x353   : > { %1073 = vmatpush.bf16.msrb.mxu1 %v2881_v57 }
 0x354   : > { %v2884_v58 = vpop.f32.mrf.mxu2 }
 0x355   : > { %v2986_v31 = vpack.c.bf16 %v2884_v58, %v2871_v54 }
 0x357   : > { %1074 = vmatpush.bf16.msrb.mxu1 %v2850_v38  ;;  %v3018_v37 = vsel %vm958_vm14, %v2986_v31, 0 }
 0x358   : > { %1012 = vmatpush.bf16.xpose.msra.mxu3 %v2889_v59 }
 0x35b   : > { %1075 = vmatpush.bf16.msrb.mxu1 %v2846_v34 }
 0x35c   : > { %v900_v60 = vpop.f32.mrf.mxu2 }
 0x35f   : > { %1076 = vmatpush.bf16.msrb.mxu1 %v2842_v30 }
 0x360   : > { %1013 = vmatpush.bf16.xpose.msra.mxu3 %v2896_v61 }
 0x363   : > { %1077 = vmatpush.bf16.msrb.mxu1 %v2838_v26 }
 0x364   : > { %v902_v62 = vpop.f32.mrf.mxu2 }
 0x365   : > { %v2900_v63 = vpack.c.bf16 %v902_v62, %v900_v60 }
 0x367   : > { %v3007_v35 = vsel %vm958_vm14, %v2900_v63, 0 }
 0x368   : > { %1014 = vmatpush.bf16.xpose.msra.mxu3 %v2904_v0 }
 0x36c   : > { %v905_v1 = vpop.f32.mrf.mxu2 }
 0x370   : > { %1015 = vmatpush.bf16.xpose.msra.mxu3 %v2909_v2 }
 0x374   : > { %v907_v3 = vpop.f32.mrf.mxu2 }
 0x375   : > { %v2912_v4 = vpack.c.bf16 %v907_v3, %v905_v1 }
 0x377   : > { %v2999_v33 = vsel %vm958_vm14, %v2912_v4, 0 }
 0x378   : > { %1016 = vmatpush.bf16.xpose.msra.mxu3 %v2916_v5 }
 0x37c   : > { %v910_v6 = vpop.f32.mrf.mxu2 }
 0x380   : > { %1017 = vmatpush.bf16.xpose.msra.mxu3 %v2921_v7 }
 0x384   : > { %v912_v8 = vpop.f32.mrf.mxu2 }
 0x385   : > { %v2925_v9 = vpack.c.bf16 %v912_v8, %v910_v6 }
 0x387   : > { %2352 = vmatmul.msk.bf16.vlgmr.msra.gmra.mxu3 %vm958_vm14, %v2817_v14  ;;  %v2992_v32 = vsel %vm958_vm14, %v2925_v9, 0 }
 0x388   : > { %1103 = vmatpush.bf16.xpose.msrb.mxu3 %v2865_v52 }
 0x38c   : > { %v915_v10 = vpop.f32.mrf.mxu2 }
 0x390   : > { %1104 = vmatpush.bf16.xpose.msrb.mxu3 %v2878_v56 }
 0x394   : > { %v917_v11 = vpop.f32.mrf.mxu2 }
 0x395   : > { %v2964_v27 = vpack.c.bf16 %v917_v11, %v915_v10 }
 0x397   : > { %v2980_v29 = vsel %vm958_vm14, %v2964_v27, 0 }
 0x398   : > { %1105 = vmatpush.bf16.xpose.msrb.mxu3 %v2889_v59 }
 0x39c   : > { %v920_v12 = vpop.f32.mrf.mxu2 }
 0x3a0   : > { %1106 = vmatpush.bf16.xpose.msrb.mxu3 %v2896_v61 }
 0x3a4   : > { %v922_v13 = vpop.f32.mrf.mxu2 }
 0x3a5   : > { %v2955_v24 = vpack.c.bf16 %v922_v13, %v920_v12 }
 0x3a7   : > { %v2971_v28 = vsel %vm958_vm14, %v2955_v24, 0 }
 0x3a8   : > { %1107 = vmatpush.bf16.xpose.msrb.mxu3 %v2904_v0 }
 0x3ac   : > { %v925_v15 = vpop.f32.mrf.mxu2 }
 0x3b0   : > { %1108 = vmatpush.bf16.xpose.msrb.mxu3 %v2909_v2 }
 0x3b4   : > { %v927_v16 = vpop.f32.mrf.mxu2 }
 0x3b5   : > { %v2951_v23 = vpack.c.bf16 %v927_v16, %v925_v15 }
 0x3b7   : > { %v2960_v25 = vsel %vm958_vm14, %v2951_v23, 0 }
 0x3b8   : > { %1109 = vmatpush.bf16.xpose.msrb.mxu3 %v2916_v5 }
 0x3bc   : > { %v930_v17 = vpop.f32.mrf.mxu2 }
 0x3c0   : > { %1110 = vmatpush.bf16.xpose.msrb.mxu3 %v2921_v7 }
 0x3c4   : > { %v932_v20 = vpop.f32.mrf.mxu2 }
 0x3c5   : > { %v2942_v21 = vpack.c.bf16 %v932_v20, %v930_v17 }
 0x3c7   : > { %2354 = vmatmul.msk.bf16.vlgmr.msrb.gmra.mxu3 %vm958_vm14, %v2937_v19  ;;  %1084 = vmatpush.bf16.msra.mxu1 %v2942_v21  ;;  %v2947_v22 = vsel %vm958_vm14, %v2942_v21, 0 }
 0x3c8   : > { %1196 = vmatpush.bf16.xpose.msra.mxu3 %v2865_v52  ;;  %1024 = vmatpush.bf16.xpose.msrb.mxu0 %v2947_v22 }
 0x3c9   : > { %1303 = vmatpush.bf16.xpose.msrb.mxu2 %v2947_v22 }
 0x3cb   : > { %1085 = vmatpush.bf16.msra.mxu1 %v2951_v23 }
 0x3cf   : > { %1086 = vmatpush.bf16.msra.mxu1 %v2955_v24 }
 0x3d0   : > { %1197 = vmatpush.bf16.xpose.msra.mxu3 %v2878_v56  ;;  %1025 = vmatpush.bf16.xpose.msrb.mxu0 %v2960_v25 }
 0x3d1   : > { %1304 = vmatpush.bf16.xpose.msrb.mxu2 %v2960_v25 }
 0x3d3   : > { %1087 = vmatpush.bf16.msra.mxu1 %v2964_v27 }
 0x3d7   : > { %1088 = vmatpush.bf16.msra.mxu1 %v2925_v9 }
 0x3d8   : > { %1198 = vmatpush.bf16.xpose.msra.mxu3 %v2889_v59  ;;  %1026 = vmatpush.bf16.xpose.msrb.mxu0 %v2971_v28 }
 0x3d9   : > { %1305 = vmatpush.bf16.xpose.msrb.mxu2 %v2971_v28 }
 0x3db   : > { %1089 = vmatpush.bf16.msra.mxu1 %v2912_v4 }
 0x3df   : > { %1090 = vmatpush.bf16.msra.mxu1 %v2900_v63 }
 0x3e0   : > { %1199 = vmatpush.bf16.xpose.msra.mxu3 %v2896_v61  ;;  %1027 = vmatpush.bf16.xpose.msrb.mxu0 %v2980_v29 }
 0x3e1   : > { %1306 = vmatpush.bf16.xpose.msrb.mxu2 %v2980_v29 }
 0x3e3   : > { %1091 = vmatpush.bf16.msra.mxu1 %v2986_v31 }
 0x3e8   : > { %1200 = vmatpush.bf16.xpose.msra.mxu3 %v2904_v0  ;;  %1028 = vmatpush.bf16.xpose.msrb.mxu0 %v2992_v32 }
 0x3e9   : > { %1307 = vmatpush.bf16.xpose.msrb.mxu2 %v2992_v32 }
 0x3f0   : > { %1201 = vmatpush.bf16.xpose.msra.mxu3 %v2909_v2  ;;  %1029 = vmatpush.bf16.xpose.msrb.mxu0 %v2999_v33 }
 0x3f1   : > { %1308 = vmatpush.bf16.xpose.msrb.mxu2 %v2999_v33 }
 0x3f8   : > { %1202 = vmatpush.bf16.xpose.msra.mxu3 %v2916_v5  ;;  %1030 = vmatpush.bf16.xpose.msrb.mxu0 %v3007_v35 }
 0x3f9   : > { %1309 = vmatpush.bf16.xpose.msrb.mxu2 %v3007_v35 }
 0x400   : > { %1203 = vmatpush.bf16.xpose.msra.mxu3 %v2921_v7  ;;  %1031 = vmatpush.bf16.xpose.msrb.mxu0 %v3018_v37 }
 0x401   : > { %1310 = vmatpush.bf16.xpose.msrb.mxu2 %v3018_v37 }
 0x407   : > { %2356 = vmatmul.msk.bf16.vlgmr.msra.gmra.mxu3 %vm958_vm14, %v3009_v36  ;;  %2353 = vmatmul.msk.bf16.vlgmr.msrb.gmra.mxu0 %vm958_vm14, %v2817_v14 }
 0x408   : > { %1289 = vmatpush.bf16.xpose.msrb.mxu3 %v2865_v52  ;;  %1117 = vmatpush.bf16.xpose.msra.mxu0 %v2947_v22 }
 0x409   : > { %1456 = vmatpush.bf16.msra.mxu2 %v2942_v21 }
 0x40a   : > { %2359 = vmatmul.msk.bf16.vlgmr.msrb.gmra.mxu2 %vm958_vm14, %v1285_v39  ;;  %v1019_v40 = vpop.f32.mrf.mxu3 }
 0x40d   : > { %1457 = vmatpush.bf16.msra.mxu2 %v2951_v23 }
 0x410   : > { %1290 = vmatpush.bf16.xpose.msrb.mxu3 %v2878_v56  ;;  %1118 = vmatpush.bf16.xpose.msra.mxu0 %v2960_v25 }
 0x411   : > { %1458 = vmatpush.bf16.msra.mxu2 %v2955_v24 }
 0x412   : > { %v1021_v43 = vpop.f32.mrf.mxu3 }
 0x415   : > { %1459 = vmatpush.bf16.msra.mxu2 %v2964_v27 }
 0x418   : > { %1291 = vmatpush.bf16.xpose.msrb.mxu3 %v2889_v59  ;;  %1119 = vmatpush.bf16.xpose.msra.mxu0 %v2971_v28 }
 0x419   : > { %1460 = vmatpush.bf16.msra.mxu2 %v2925_v9 }
 0x41d   : > { %1461 = vmatpush.bf16.msra.mxu2 %v2912_v4 }
 0x420   : > { %1292 = vmatpush.bf16.xpose.msrb.mxu3 %v2896_v61  ;;  %1120 = vmatpush.bf16.xpose.msra.mxu0 %v2980_v29 }
 0x421   : > { %1462 = vmatpush.bf16.msra.mxu2 %v2900_v63 }
 0x425   : > { %1463 = vmatpush.bf16.msra.mxu2 %v2986_v31 }
 0x428   : > { %1293 = vmatpush.bf16.xpose.msrb.mxu3 %v2904_v0  ;;  %1121 = vmatpush.bf16.xpose.msra.mxu0 %v2992_v32 }
 0x429   : > { %1489 = vmatpush.bf16.xpose.msrb.mxu2 %v2947_v22 }
 0x430   : > { %1294 = vmatpush.bf16.xpose.msrb.mxu3 %v2909_v2  ;;  %1122 = vmatpush.bf16.xpose.msra.mxu0 %v2999_v33 }
 0x431   : > { %1490 = vmatpush.bf16.xpose.msrb.mxu2 %v2960_v25 }
 0x438   : > { %1295 = vmatpush.bf16.xpose.msrb.mxu3 %v2916_v5  ;;  %1123 = vmatpush.bf16.xpose.msra.mxu0 %v3007_v35 }
 0x439   : > { %1491 = vmatpush.bf16.xpose.msrb.mxu2 %v2971_v28 }
 0x440   : > { %1296 = vmatpush.bf16.xpose.msrb.mxu3 %v2921_v7  ;;  %1124 = vmatpush.bf16.xpose.msra.mxu0 %v3018_v37 }
 0x441   : > { %1492 = vmatpush.bf16.xpose.msrb.mxu2 %v2980_v29 }
 0x447   : > { %2358 = vmatmul.msk.bf16.vlgmr.msrb.gmra.mxu3 %vm958_vm14, %v1285_v39  ;;  %2355 = vmatmul.msk.bf16.vlgmr.msra.gmra.mxu0 %vm958_vm14, %v2937_v19 }
 0x448   : > { %1442 = vmatpush.bf16.msra.mxu3 %v2860_v51  ;;  %1210 = vmatpush.bf16.xpose.msrb.mxu0 %v2947_v22 }
 0x449   : > { %1493 = vmatpush.bf16.xpose.msrb.mxu2 %v2992_v32 }
 0x44a   : > { %v1112_v46 = vpop.f32.mrf.mxu3 }
 0x44c   : > { %1443 = vmatpush.bf16.msra.mxu3 %v2868_v53 }
 0x450   : > { %1444 = vmatpush.bf16.msra.mxu3 %v2873_v55  ;;  %1211 = vmatpush.bf16.xpose.msrb.mxu0 %v2960_v25 }
 0x451   : > { %1494 = vmatpush.bf16.xpose.msrb.mxu2 %v2999_v33 }
 0x452   : > { %v1114_v49 = vpop.f32.mrf.mxu3 }
 0x454   : > { %1445 = vmatpush.bf16.msra.mxu3 %v2881_v57 }
 0x458   : > { %1446 = vmatpush.bf16.msra.mxu3 %v2850_v38  ;;  %1212 = vmatpush.bf16.xpose.msrb.mxu0 %v2971_v28 }
 0x459   : > { %1495 = vmatpush.bf16.xpose.msrb.mxu2 %v3007_v35 }
 0x45c   : > { %1447 = vmatpush.bf16.msra.mxu3 %v2846_v34 }
 0x460   : > { %1448 = vmatpush.bf16.msra.mxu3 %v2842_v30  ;;  %1213 = vmatpush.bf16.xpose.msrb.mxu0 %v2980_v29 }
 0x461   : > { %1496 = vmatpush.bf16.xpose.msrb.mxu2 %v3018_v37 }
 0x464   : > { %1449 = vmatpush.bf16.msra.mxu3 %v2838_v26 }
 0x468   : > { %1475 = vmatpush.bf16.xpose.msrb.mxu3 %v2865_v52  ;;  %1214 = vmatpush.bf16.xpose.msrb.mxu0 %v2992_v32 }
 0x470   : > { %1476 = vmatpush.bf16.xpose.msrb.mxu3 %v2878_v56  ;;  %1215 = vmatpush.bf16.xpose.msrb.mxu0 %v2999_v33 }
 0x478   : > { %1477 = vmatpush.bf16.xpose.msrb.mxu3 %v2889_v59  ;;  %1216 = vmatpush.bf16.xpose.msrb.mxu0 %v3007_v35 }
 0x480   : > { %1478 = vmatpush.bf16.xpose.msrb.mxu3 %v2896_v61  ;;  %1217 = vmatpush.bf16.xpose.msrb.mxu0 %v3018_v37 }
 0x484   : > { %v1033_v41 = vpop.f32.mrf.mxu0 }
 0x485   : > { %v1038_v42 = vmax.f32 %v1019_v40, %v1033_v41 }
 0x487   : > { %2357 = vmatmul.msk.bf16.vlgmr.msrb.gmra.mxu0 %vm958_vm14, %v3009_v36  ;;  %1039 = vmax.xlane.f32.xlu1 %v1038_v42 }
 0x488   : > { %1479 = vmatpush.bf16.xpose.msrb.mxu3 %v2904_v0  ;;  %1349 = vmatpush.bf16.msra.mxu0 %v2860_v51 }
 0x48a   : > { %v3100_v58 = vpop.f32.mrf.mxu3 }
 0x48c   : > { %1350 = vmatpush.bf16.msra.mxu0 %v2868_v53  ;;  %v1035_v44 = vpop.f32.mrf.mxu0 }
 0x48d   : > { %v1041_v45 = vmax.f32 %v1021_v43, %v1035_v44  ;;  %v3106_v15 = vpop.f32.mrf.mxu2 }
 0x48f   : > { %1042 = vmax.xlane.f32.xlu2 %v1041_v45 }
 0x490   : > { %1480 = vmatpush.bf16.xpose.msrb.mxu3 %v2909_v2  ;;  %1351 = vmatpush.bf16.msra.mxu0 %v2873_v55 }
 0x492   : > { %v3102_v60 = vpop.f32.mrf.mxu3 }
 0x494   : > { %1352 = vmatpush.bf16.msra.mxu0 %v2881_v57 }
 0x495   : > { %v3115_v42 = vpop.f32.mrf.mxu2 }
 0x498   : > { %1481 = vmatpush.bf16.xpose.msrb.mxu3 %v2916_v5  ;;  %1353 = vmatpush.bf16.msra.mxu0 %v2850_v38 }
 0x49c   : > { %1354 = vmatpush.bf16.msra.mxu0 %v2846_v34 }
 0x4a0   : > { %1482 = vmatpush.bf16.xpose.msrb.mxu3 %v2921_v7  ;;  %1355 = vmatpush.bf16.msra.mxu0 %v2842_v30 }
 0x4a4   : > { %1356 = vmatpush.bf16.msra.mxu0 %v2838_v26 }
 0x4a8   : > { %1382 = vmatpush.bf16.xpose.msrb.mxu0 %v2865_v52 }
 0x4b0   : > { %1383 = vmatpush.bf16.xpose.msrb.mxu0 %v2878_v56 }
 0x4b8   : > { %1384 = vmatpush.bf16.xpose.msrb.mxu0 %v2889_v59 }
 0x4c0   : > { %1385 = vmatpush.bf16.xpose.msrb.mxu0 %v2896_v61 }
 0x4c4   : > { %v1126_v47 = vpop.f32.mrf.mxu0 }
 0x4c5   : > { %v1131_v48 = vmax.f32 %v1112_v46, %v1126_v47 }
 0x4c7   : > { %1132 = vmax.xlane.f32.xlu1 %v1131_v48 }
 0x4c8   : > { %1386 = vmatpush.bf16.xpose.msrb.mxu0 %v2904_v0 }
 0x4ca   : > { %v3104_v10 = vpop.f32.mrf.mxu3 }
 0x4cc   : > { %v1128_v50 = vpop.f32.mrf.mxu0 }
 0x4cd   : > { %v1134_v54 = vmax.f32 %v1114_v49, %v1128_v50 }
 0x4cf   : > { %1135 = vmax.xlane.f32.xlu1 %v1134_v54 }
 0x4d0   : > { %1387 = vmatpush.bf16.xpose.msrb.mxu0 %v2909_v2 }
 0x4d2   : > { %v3111_v39 = vpop.f32.mrf.mxu3 }
 0x4d8   : > { %1388 = vmatpush.bf16.xpose.msrb.mxu0 %v2916_v5 }
 0x4e0   : > { %1389 = vmatpush.bf16.xpose.msrb.mxu0 %v2921_v7 }
 0x4fa   : > { %v1040_v62 = vpop.xlane.xlu1 %1039 }
 0x4fb   : > { %v1044_v1 = vsub.f32 %v1019_v40, %v1040_v62  ;;  %v1045_v3 = vsub.f32 %v1033_v41, %v1040_v62 }
 0x4fd   : > { %v1048_v6 = vmul.f32 1.442695, %v1044_v1  ;;  %v1050_v8 = vmul.f32 1.442695, %v1045_v3 }
 0x4ff   : > { %2526 = vpow2.f32 %v1048_v6 }
 0x500   : > { %2528 = vpow2.f32 %v1050_v8 }
 0x502   : > { %v1043_v11 = vpop.xlane.xlu2 %1042 }
 0x503   : > { %v1046_v12 = vsub.f32 %v1021_v43, %v1043_v11  ;;  %v1047_v13 = vsub.f32 %v1035_v44, %v1043_v11  ;;  %v1320_v43 = vmax.f32 %v3111_v39, %v3115_v42 }
 0x504   : > { %v1219_v45 = vpop.f32.mrf.mxu0 }
 0x505   : > { %v2527_v16 = vpop.eup %2526  ;;  %v1052_v17 = vmul.f32 1.442695, %v1046_v12  ;;  %v1054_v19 = vmul.f32 1.442695, %v1047_v13  ;;  %v1224_v48 = vmax.f32 %v3100_v58, %v1219_v45 }
 0x506   : > { %v3108_v20 = vpop.eup %2528 }
 0x507   : > { %2530 = vpow2.f32 %v1052_v17  ;;  %v1056_v36 = vadd.f32 %v3108_v20, %v2527_v16 }
 0x508   : > { %2532 = vpow2.f32 %v1054_v19 }
 0x509   : > { %1057 = vadd.xlane.f32.xlu0 %v1056_v36 }
 0x50c   : > { %v1221_v54 = vpop.f32.mrf.mxu0 }
 0x50d   : > { %v2531_v40 = vpop.eup %2530  ;;  %v1227_v62 = vmax.f32 %v3102_v60, %v1221_v54 }
 0x50e   : > { %v3113_v41 = vpop.eup %2532 }
 0x50f   : > { %v1059_v44 = vadd.f32 %v3113_v41, %v2531_v40 }
 0x511   : > { %1321 = vmax.xlane.f32.xlu0 %v1320_v43  ;;  %1060 = vadd.xlane.f32.xlu1 %v1059_v44 }
 0x519   : > { %1225 = vmax.xlane.f32.xlu1 %v1224_v48 }
 0x521   : > { %1228 = vmax.xlane.f32.xlu1 %v1227_v62 }
 0x525   : > { %1377 = vrot.lane.b32.xlu0 %v2817_v14, %s2650_s30 }
 0x53a   : > { %v1133_v1 = vpop.xlane.xlu1 %1132 }
 0x53b   : > { %v1137_v3 = vsub.f32 %v1112_v46, %v1133_v1  ;;  %v1138_v6 = vsub.f32 %v1126_v47, %v1133_v1 }
 0x53d   : > { %v1141_v8 = vmul.f32 1.442695, %v1137_v3  ;;  %v1143_v11 = vmul.f32 1.442695, %v1138_v6 }
 0x53f   : > { %2534 = vpow2.f32 %v1141_v8 }
 0x540   : > { %2536 = vpow2.f32 %v1143_v11 }
 0x542   : > { %v1136_v12 = vpop.xlane.xlu1 %1135 }
 0x543   : > { %v1139_v13 = vsub.f32 %v1114_v49, %v1136_v12  ;;  %v1140_v17 = vsub.f32 %v1128_v50, %v1136_v12 }
 0x545   : > { %v3123_v19 = vpop.eup %2534  ;;  %v1145_v36 = vmul.f32 1.442695, %v1139_v13  ;;  %v1147_v43 = vmul.f32 1.442695, %v1140_v17 }
 0x546   : > { %v3125_v44 = vpop.eup %2536 }
 0x547   : > { %2538 = vpow2.f32 %v1145_v36  ;;  %v1149_v48 = vadd.f32 %v3125_v44, %v3123_v19 }
 0x548   : > { %2540 = vpow2.f32 %v1147_v43 }
 0x549   : > { %1150 = vadd.xlane.f32.xlu2 %v1149_v48 }
 0x54d   : > { %v3129_v46 = vpop.eup %2538 }
 0x54e   : > { %v3131_v47 = vpop.eup %2540 }
 0x54f   : > { %v1152_v49 = vadd.f32 %v3131_v47, %v3129_v46 }
 0x551   : > { %1153 = vadd.xlane.f32.xlu1 %v1152_v49 }
 0x57c   : > { %v1058_v50 = vpop.xlane.xlu0 %1057 }
 0x57d   : > { %2542 = vrcp.f32 %v1058_v50 }
 0x583   : > { %v2543_v1 = vpop.eup %2542 }
 0x584   : > { %v1061_v62 = vpop.xlane.xlu1 %1060  ;;  %v1064_v8 = vmul.f32 %v2543_v1, %v2527_v16  ;;  %v1322_v48 = vpop.xlane.xlu0 %1321 }
 0x585   : > { %2544 = vrcp.f32 %v1061_v62 }
 0x58b   : > { %v2545_v3 = vpop.eup %2544 }
 0x58c   : > { %v1226_v6 = vpop.xlane.xlu1 %1225  ;;  %v1066_v11 = vmul.f32 %v2545_v3, %v2531_v40 }
 0x58d   : > { %v1230_v12 = vsub.f32 %v3100_v58, %v1226_v6  ;;  %v1231_v13 = vsub.f32 %v1219_v45, %v1226_v6  ;;  %v1325_v58 = vsub.f32 %v3111_v39, %v1322_v48 }
 0x58e   : > { %v1068_v17 = vpack.c.bf16 %v1066_v11, %v1064_v8  ;;  %v1326_v8 = vsub.f32 %v3115_v42, %v1322_v48 }
 0x58f   : > { %v1234_v36 = vmul.f32 1.442695, %v1230_v12  ;;  %v1236_v43 = vmul.f32 1.442695, %v1231_v13  ;;  %v1067_v12 = vmul.f32 %v2545_v3, %v3113_v41  ;;  %v1317_v41 = vmax.f32 %v3104_v10, %v3106_v15 }
 0x590   : > { %1078 = vmatmul.bf16.vlgmr.msrb.gmra.mxu1 %v1068_v17  ;;  %v1333_v39 = vmul.f32 1.442695, %v1326_v8 }
 0x591   : > { %2546 = vpow2.f32 %v1234_v36  ;;  %1163 = vmatpush.bf16.msrb.mxu1 %v2860_v51 }
 0x592   : > { %2548 = vpow2.f32 %v1236_v43 }
 0x594   : > { %v1229_v49 = vpop.xlane.xlu1 %1228 }
 0x595   : > { %1164 = vmatpush.bf16.msrb.mxu1 %v2868_v53  ;;  %v1232_v50 = vsub.f32 %v3102_v60, %v1229_v49  ;;  %v1233_v62 = vsub.f32 %v1221_v54, %v1229_v49  ;;  %v1331_v60 = vmul.f32 1.442695, %v1325_v58  ;;  %v1065_v54 = vmul.f32 %v2543_v1, %v3108_v20 }
 0x597   : > { %v3139_v16 = vpop.eup %2546  ;;  %v1238_v40 = vmul.f32 1.442695, %v1232_v50  ;;  %v1240_v45 = vmul.f32 1.442695, %v1233_v62  ;;  %v1069_v13 = vpack.c.bf16 %v1067_v12, %v1065_v54 }
 0x598   : > { %v3142_v6 = vpop.eup %2548 }
 0x599   : > { %2550 = vpow2.f32 %v1238_v40  ;;  %1165 = vmatpush.bf16.msrb.mxu1 %v2873_v55  ;;  %v1242_v11 = vadd.f32 %v3142_v6, %v3139_v16 }
 0x59a   : > { %2552 = vpow2.f32 %v1240_v45 }
 0x59b   : > { %1243 = vadd.xlane.f32.xlu2 %v1242_v11  ;;  %2554 = vpow2.f32 %v1331_v60 }
 0x59c   : > { %2556 = vpow2.f32 %v1333_v39 }
 0x59d   : > { %1166 = vmatpush.bf16.msrb.mxu1 %v2881_v57 }
 0x59f   : > { %v3151_v17 = vpop.eup %2550 }
 0x5a0   : > { %v3153_v42 = vpop.eup %2552  ;;  %1092 = vmatmul.bf16.vlgmr.msra.gmra.mxu1 %v1069_v13 }
 0x5a1   : > { %1167 = vmatpush.bf16.msrb.mxu1 %v2850_v38  ;;  %v1245_v3 = vadd.f32 %v3153_v42, %v3151_v17  ;;  %v3160_v20 = vpop.eup %2554 }
 0x5a2   : > { %v3163_v1 = vpop.eup %2556 }
 0x5a3   : > { %1318 = vmax.xlane.f32.xlu2 %v1317_v41  ;;  %1246 = vadd.xlane.f32.xlu1 %v1245_v3  ;;  %v1338_v36 = vadd.f32 %v3163_v1, %v3160_v20 }
 0x5a5   : > { %1168 = vmatpush.bf16.msrb.mxu1 %v2846_v34 }
 0x5a9   : > { %1169 = vmatpush.bf16.msrb.mxu1 %v2842_v30 }
 0x5ab   : > { %1339 = vadd.xlane.f32.xlu2 %v1338_v36 }
 0x5ad   : > { %1170 = vmatpush.bf16.msrb.mxu1 %v2838_v26 }
 0x5b1   : > { %1177 = vmatpush.bf16.msra.mxu1 %v2942_v21 }
 0x5b5   : > { %1178 = vmatpush.bf16.msra.mxu1 %v2951_v23 }
 0x5b9   : > { %1179 = vmatpush.bf16.msra.mxu1 %v2955_v24 }
 0x5bc   : > { %v1151_v43 = vpop.xlane.xlu2 %1150 }
 0x5bd   : > { %1180 = vmatpush.bf16.msra.mxu1 %v2964_v27  ;;  %2558 = vrcp.f32 %v1151_v43 }
 0x5c1   : > { %1181 = vmatpush.bf16.msra.mxu1 %v2925_v9 }
 0x5c3   : > { %v2559_v49 = vpop.eup %2558 }
 0x5c4   : > { %v1154_v48 = vpop.xlane.xlu1 %1153  ;;  %v1157_v62 = vmul.f32 %v2559_v49, %v3123_v19  ;;  %v1158_v8 = vmul.f32 %v2559_v49, %v3125_v44 }
 0x5c5   : > { %2560 = vrcp.f32 %v1154_v48  ;;  %1182 = vmatpush.bf16.msra.mxu1 %v2912_v4 }
 0x5c9   : > { %1183 = vmatpush.bf16.msra.mxu1 %v2900_v63 }
 0x5cb   : > { %v2561_v50 = vpop.eup %2560 }
 0x5cc   : > { %v1159_v58 = vmul.f32 %v2561_v50, %v3129_v46  ;;  %v1160_v45 = vmul.f32 %v2561_v50, %v3131_v47 }
 0x5cd   : > { %1184 = vmatpush.bf16.msra.mxu1 %v2986_v31 }
 0x5ce   : > { %v1161_v40 = vpack.c.bf16 %v1159_v58, %v1157_v62  ;;  %v1162_v19 = vpack.c.bf16 %v1160_v45, %v1158_v8 }
 0x5d0   : > { %1171 = vmatmul.bf16.vlgmr.msrb.gmra.mxu1 %v1161_v40 }
 0x5d1   : > { %1256 = vmatpush.bf16.msrb.mxu1 %v2860_v51 }
 0x5d5   : > { %1257 = vmatpush.bf16.msrb.mxu1 %v2868_v53 }
 0x5d9   : > { %1258 = vmatpush.bf16.msrb.mxu1 %v2873_v55 }
 0x5dd   : > { %1259 = vmatpush.bf16.msrb.mxu1 %v2881_v57 }
 0x5e0   : > { %1185 = vmatmul.bf16.vlgmr.msra.gmra.mxu1 %v1162_v19 }
 0x5e1   : > { %1260 = vmatpush.bf16.msrb.mxu1 %v2850_v38 }
 0x5e5   : > { %1261 = vmatpush.bf16.msrb.mxu1 %v2846_v34 }
 0x5e9   : > { %1262 = vmatpush.bf16.msrb.mxu1 %v2842_v30 }
 0x5ed   : > { %1263 = vmatpush.bf16.msrb.mxu1 %v2838_v26 }
 0x5f1   : > { %1270 = vmatpush.bf16.msra.mxu1 %v2942_v21 }
 0x5f5   : > { %1271 = vmatpush.bf16.msra.mxu1 %v2951_v23 }
 0x5f9   : > { %1272 = vmatpush.bf16.msra.mxu1 %v2955_v24 }
 0x5fd   : > { %1273 = vmatpush.bf16.msra.mxu1 %v2964_v27 }
 0x601   : > { %1274 = vmatpush.bf16.msra.mxu1 %v2925_v9 }
 0x605   : > { %1275 = vmatpush.bf16.msra.mxu1 %v2912_v4 }
 0x609   : > { %1276 = vmatpush.bf16.msra.mxu1 %v2900_v63 }
 0x60d   : > { %1277 = vmatpush.bf16.msra.mxu1 %v2986_v31  ;;  %v1079_v44 = vpop.f32.mrf.mxu1 }
 0x60e   : > { %v1244_v46 = vpop.xlane.xlu2 %1243 }
 0x60f   : > { %2562 = vrcp.f32 %v1244_v46 }
 0x615   : > { %v3197_v47 = vpop.f32.mrf.mxu1  ;;  %v2563_v41 = vpop.eup %2562 }
 0x616   : > { %v1247_v11 = vpop.xlane.xlu1 %1246  ;;  %v1319_v12 = vpop.xlane.xlu2 %1318  ;;  %v1250_v43 = vmul.f32 %v2563_v41, %v3139_v16  ;;  %v1251_v16 = vmul.f32 %v2563_v41, %v3142_v6 }
 0x617   : > { %2564 = vrcp.f32 %v1247_v11  ;;  %v1323_v60 = vsub.f32 %v3104_v10, %v1319_v12  ;;  %v1324_v54 = vsub.f32 %v3106_v15, %v1319_v12 }
 0x619   : > { %v1327_v39 = vmul.f32 1.442695, %v1323_v60  ;;  %v1329_v13 = vmul.f32 1.442695, %v1324_v54 }
 0x61b   : > { %2566 = vpow2.f32 %v1327_v39 }
 0x61c   : > { %2568 = vpow2.f32 %v1329_v13 }
 0x61d   : > { %v2565_v3 = vpop.eup %2564  ;;  %v1093_v36 = vpop.f32.mrf.mxu1 }
 0x61e   : > { %v1252_v48 = vmul.f32 %v2565_v3, %v3151_v17  ;;  %v3203_v49 = vadd.f32 %v1093_v36, %v1079_v44  ;;  %v1253_v15 = vmul.f32 %v2565_v3, %v3153_v42  ;;  %v1340_v11 = vpop.xlane.xlu2 %1339 }
 0x61f   : > { %2570 = vrcp.f32 %v1340_v11 }
 0x620   : > { %v1254_v50 = vpack.c.bf16 %v1252_v48, %v1250_v43  ;;  %v1255_v17 = vpack.c.bf16 %v1253_v15, %v1251_v16 }
 0x621   : > { %v2567_v62 = vpop.eup %2566 }
 0x622   : > { %v2569_v58 = vpop.eup %2568  ;;  %1264 = vmatmul.bf16.vlgmr.msrb.gmra.mxu1 %v1254_v50 }
 0x623   : > { %1363 = vmatpush.bf16.msrb.mxu1 %v2942_v21  ;;  %v1335_v10 = vadd.f32 %v2569_v58, %v2567_v62 }
 0x625   : > { %1336 = vadd.xlane.f32.xlu1 %v1335_v10  ;;  %v3214_v40 = vpop.f32.mrf.mxu1  ;;  %v2571_v60 = vpop.eup %2570 }
 0x626   : > { %v1345_v13 = vmul.f32 %v2571_v60, %v3160_v20  ;;  %v1346_v41 = vmul.f32 %v2571_v60, %v3163_v1 }
 0x627   : > { %1364 = vmatpush.bf16.msrb.mxu1 %v2951_v23 }
 0x62b   : > { %1365 = vmatpush.bf16.msrb.mxu1 %v2955_v24 }
 0x62f   : > { %1366 = vmatpush.bf16.msrb.mxu1 %v2964_v27 }
 0x632   : > { %1278 = vmatmul.bf16.vlgmr.msra.gmra.mxu1 %v1255_v17 }
 0x633   : > { %1367 = vmatpush.bf16.msrb.mxu1 %v2925_v9 }
 0x637   : > { %1368 = vmatpush.bf16.msrb.mxu1 %v2912_v4 }
 0x63b   : > { %1369 = vmatpush.bf16.msrb.mxu1 %v2900_v63 }
 0x63f   : > { %1370 = vmatpush.bf16.msrb.mxu1 %v2986_v31 }
 0x643   : > { %1396 = vmatpush.bf16.xpose.msra.mxu1 %v2947_v22 }
 0x64b   : > { %1397 = vmatpush.bf16.xpose.msra.mxu1 %v2960_v25 }
 0x64d   : > { %v1172_v45 = vpop.f32.mrf.mxu1 }
 0x653   : > { %1398 = vmatpush.bf16.xpose.msra.mxu1 %v2971_v28 }
 0x655   : > { %v1174_v6 = vpop.f32.mrf.mxu1 }
 0x65b   : > { %1399 = vmatpush.bf16.xpose.msra.mxu1 %v2980_v29 }
 0x65d   : > { %v1186_v42 = vpop.f32.mrf.mxu1 }
 0x65e   : > { %v3220_v8 = vadd.f32 %v1186_v42, %v1172_v45 }
 0x663   : > { %1400 = vmatpush.bf16.xpose.msra.mxu1 %v2992_v32 }
 0x665   : > { %v1188_v19 = vpop.f32.mrf.mxu1 }
 0x666   : > { %v3223_v44 = vadd.f32 %v1188_v19, %v1174_v6 }
 0x66b   : > { %1401 = vmatpush.bf16.xpose.msra.mxu1 %v2999_v33 }
 0x673   : > { %1402 = vmatpush.bf16.xpose.msra.mxu1 %v3007_v35 }
 0x67b   : > { %1403 = vmatpush.bf16.xpose.msra.mxu1 %v3018_v37 }
 0x698   : > { %v1337_v12 = vpop.xlane.xlu1 %1336 }
 0x699   : > { %2572 = vrcp.f32 %v1337_v12 }
 0x69f   : > { %v2573_v54 = vpop.eup %2572  ;;  %v1265_v39 = vpop.f32.mrf.mxu1 }
 0x6a0   : > { %v1343_v3 = vmul.f32 %v2573_v54, %v2567_v62  ;;  %v1344_v36 = vmul.f32 %v2573_v54, %v2569_v58  ;;  %v1378_v62 = vpop.permute.xlu0 %1377 }
 0x6a2   : > { %v1347_v43 = vpack.c.bf16 %v1345_v13, %v1343_v3  ;;  %v1348_v48 = vpack.c.bf16 %v1346_v41, %v1344_v36 }
 0x6a4   : > { %1357 = vmatmul.bf16.vlgmr.msra.gmra.mxu0 %v1347_v43  ;;  %1371 = vmatmul.bf16.vlgmr.msrb.gmra.mxu1 %v1348_v48 }
 0x6a5   : > { %1535 = vmatpush.bf16.msra.mxu0 %v2860_v51  ;;  %1549 = vmatpush.bf16.msrb.mxu1 %v2942_v21 }
 0x6a7   : > { %v1267_v50 = vpop.f32.mrf.mxu1 }
 0x6a9   : > { %1536 = vmatpush.bf16.msra.mxu0 %v2868_v53  ;;  %1550 = vmatpush.bf16.msrb.mxu1 %v2951_v23 }
 0x6ad   : > { %1537 = vmatpush.bf16.msra.mxu0 %v2873_v55  ;;  %1551 = vmatpush.bf16.msrb.mxu1 %v2955_v24 }
 0x6af   : > { %v1279_v20 = vpop.f32.mrf.mxu1 }
 0x6b0   : > { %v3239_v1 = vadd.f32 %v1279_v20, %v1265_v39 }
 0x6b1   : > { %1538 = vmatpush.bf16.msra.mxu0 %v2881_v57  ;;  %1552 = vmatpush.bf16.msrb.mxu1 %v2964_v27 }
 0x6b4   : > { %2360 = vmatmul.msk.bf16.vlgmr.msrb.gmra.mxu0 %vm958_vm14, %v1378_v62  ;;  %2361 = vmatmul.msk.bf16.vlgmr.msra.gmra.mxu1 %vm958_vm14, %v1378_v62 }
 0x6b5   : > { %1539 = vmatpush.bf16.msra.mxu0 %v2850_v38  ;;  %1553 = vmatpush.bf16.msrb.mxu1 %v2925_v9 }
 0x6b7   : > { %v1281_v58 = vpop.f32.mrf.mxu1 }
 0x6b8   : > { %v3247_v10 = vadd.f32 %v1281_v58, %v1267_v50 }
 0x6b9   : > { %1540 = vmatpush.bf16.msra.mxu0 %v2846_v34  ;;  %1554 = vmatpush.bf16.msrb.mxu1 %v2912_v4 }
 0x6ba   : > { %v2489_v15 = vpack.i.bf16 %v3247_v10, %v3239_v1 }
 0x6bd   : > { %1541 = vmatpush.bf16.msra.mxu0 %v2842_v30  ;;  %1555 = vmatpush.bf16.msrb.mxu1 %v2900_v63 }
 0x6c1   : > { %1542 = vmatpush.bf16.msra.mxu0 %v2838_v26  ;;  %1556 = vmatpush.bf16.msrb.mxu1 %v2986_v31 }
 0x6c5   : > { %1568 = vmatpush.bf16.xpose.msrb.mxu0 %v2865_v52  ;;  %1582 = vmatpush.bf16.xpose.msra.mxu1 %v2947_v22 }
 0x6cd   : > { %1569 = vmatpush.bf16.xpose.msrb.mxu0 %v2878_v56  ;;  %1583 = vmatpush.bf16.xpose.msra.mxu1 %v2960_v25 }
 0x6d5   : > { %1570 = vmatpush.bf16.xpose.msrb.mxu0 %v2889_v59  ;;  %1584 = vmatpush.bf16.xpose.msra.mxu1 %v2971_v28 }
 0x6dd   : > { %1571 = vmatpush.bf16.xpose.msrb.mxu0 %v2896_v61  ;;  %1585 = vmatpush.bf16.xpose.msra.mxu1 %v2980_v29 }
 0x6e5   : > { %1572 = vmatpush.bf16.xpose.msrb.mxu0 %v2904_v0  ;;  %1586 = vmatpush.bf16.xpose.msra.mxu1 %v2992_v32 }
 0x6ed   : > { %1573 = vmatpush.bf16.xpose.msrb.mxu0 %v2909_v2  ;;  %1587 = vmatpush.bf16.xpose.msra.mxu1 %v2999_v33 }
 0x6f5   : > { %1574 = vmatpush.bf16.xpose.msrb.mxu0 %v2916_v5  ;;  %1588 = vmatpush.bf16.xpose.msra.mxu1 %v3007_v35 }
 0x6fd   : > { %1575 = vmatpush.bf16.xpose.msrb.mxu0 %v2921_v7  ;;  %1589 = vmatpush.bf16.xpose.msra.mxu1 %v3018_v37 }
 0x721   : > { %v1358_v16 = vpop.f32.mrf.mxu0  ;;  %v1372_v17 = vpop.f32.mrf.mxu1 }
 0x722   : > { %v3273_v45 = vadd.f32 %v1372_v17, %v1358_v16 }
 0x729   : > { %v1360_v6 = vpop.f32.mrf.mxu0  ;;  %v1374_v42 = vpop.f32.mrf.mxu1 }
 0x72a   : > { %v3275_v19 = vadd.f32 %v1374_v42, %v1360_v6 }
 0x731   : > { %v1391_v12 = vpop.f32.mrf.mxu0  ;;  %v1405_v60 = vpop.f32.mrf.mxu1 }
 0x732   : > { %v1410_v54 = vmax.f32 %v1391_v12, %v1405_v60 }
 0x734   : > { %1411 = vmax.xlane.f32.xlu1 %v1410_v54 }
 0x739   : > { %v1393_v39 = vpop.f32.mrf.mxu0  ;;  %v1407_v13 = vpop.f32.mrf.mxu1 }
 0x73a   : > { %v1413_v41 = vmax.f32 %v1393_v39, %v1407_v13 }
 0x73c   : > { %1414 = vmax.xlane.f32.xlu2 %v1413_v41 }
 0x7a7   : > { %v1412_v3 = vpop.xlane.xlu1 %1411 }
 0x7a8   : > { %v1416_v36 = vsub.f32 %v1391_v12, %v1412_v3  ;;  %v1417_v43 = vsub.f32 %v1405_v60, %v1412_v3 }
 0x7aa   : > { %v1420_v48 = vmul.f32 1.442695, %v1416_v36  ;;  %v1422_v50 = vmul.f32 1.442695, %v1417_v43 }
 0x7ac   : > { %2574 = vpow2.f32 %v1420_v48 }
 0x7ad   : > { %2576 = vpow2.f32 %v1422_v50 }
 0x7af   : > { %v1415_v20 = vpop.xlane.xlu2 %1414 }
 0x7b0   : > { %v1418_v62 = vsub.f32 %v1393_v39, %v1415_v20  ;;  %v1419_v58 = vsub.f32 %v1407_v13, %v1415_v20 }
 0x7b2   : > { %v2575_v16 = vpop.eup %2574  ;;  %v1424_v17 = vmul.f32 1.442695, %v1418_v62  ;;  %v1426_v6 = vmul.f32 1.442695, %v1419_v58 }
 0x7b3   : > { %v2577_v42 = vpop.eup %2576 }
 0x7b4   : > { %2578 = vpow2.f32 %v1424_v17  ;;  %v1428_v54 = vadd.f32 %v2577_v42, %v2575_v16 }
 0x7b5   : > { %2580 = vpow2.f32 %v1426_v6 }
 0x7b6   : > { %1429 = vadd.xlane.f32.xlu1 %v1428_v54 }
 0x7ba   : > { %v2579_v11 = vpop.eup %2578 }
 0x7bb   : > { %v2581_v41 = vpop.eup %2580 }
 0x7bc   : > { %v1431_v46 = vadd.f32 %v2581_v41, %v2579_v11 }
 0x7be   : > { %1432 = vadd.xlane.f32.xlu2 %v1431_v46 }
 0x7cf   : > { %1470 = vrot.lane.b32.xlu1 %v2817_v14, %s2651_s23 }
 0x7d7   : > { %1563 = vrot.lane.b32.xlu1 %v2817_v14, %s2652_s4 }
 0x829   : > { %v1430_v12 = vpop.xlane.xlu1 %1429 }
 0x82a   : > { %2582 = vrcp.f32 %v1430_v12 }
 0x830   : > { %v2583_v39 = vpop.eup %2582 }
 0x831   : > { %v1433_v60 = vpop.xlane.xlu2 %1432  ;;  %v1436_v3 = vmul.f32 %v2583_v39, %v2575_v16  ;;  %v1437_v36 = vmul.f32 %v2583_v39, %v2577_v42 }
 0x832   : > { %2584 = vrcp.f32 %v1433_v60 }
 0x838   : > { %v2585_v13 = vpop.eup %2584 }
 0x839   : > { %v1438_v43 = vmul.f32 %v2585_v13, %v2579_v11  ;;  %v1439_v48 = vmul.f32 %v2585_v13, %v2581_v41 }
 0x83b   : > { %v1441_v50 = vpack.c.bf16 %v1439_v48, %v1437_v36  ;;  %v1440_v20 = vpack.c.bf16 %v1438_v43, %v1436_v3 }
 0x83d   : > { %1450 = vmatmul.bf16.vlgmr.msra.gmra.mxu3 %v1440_v20  ;;  %1464 = vmatmul.bf16.vlgmr.msra.gmra.mxu2 %v1441_v50 }
 0x83e   : > { %1628 = vmatpush.bf16.msra.mxu3 %v2860_v51  ;;  %1642 = vmatpush.bf16.msra.mxu2 %v2942_v21 }
 0x841   : > { %v1471_v46 = vpop.permute.xlu1 %1470 }
 0x842   : > { %1629 = vmatpush.bf16.msra.mxu3 %v2868_v53  ;;  %1643 = vmatpush.bf16.msra.mxu2 %v2951_v23 }
 0x846   : > { %1630 = vmatpush.bf16.msra.mxu3 %v2873_v55  ;;  %1644 = vmatpush.bf16.msra.mxu2 %v2955_v24 }
 0x84a   : > { %1631 = vmatpush.bf16.msra.mxu3 %v2881_v57  ;;  %1645 = vmatpush.bf16.msra.mxu2 %v2964_v27 }
 0x84d   : > { %2362 = vmatmul.msk.bf16.vlgmr.msrb.gmra.mxu3 %vm958_vm14, %v1471_v46  ;;  %2363 = vmatmul.msk.bf16.vlgmr.msrb.gmra.mxu2 %vm958_vm14, %v1471_v46 }
 0x84e   : > { %1632 = vmatpush.bf16.msra.mxu3 %v2850_v38  ;;  %1646 = vmatpush.bf16.msra.mxu2 %v2925_v9 }
 0x852   : > { %1633 = vmatpush.bf16.msra.mxu3 %v2846_v34  ;;  %1647 = vmatpush.bf16.msra.mxu2 %v2912_v4 }
 0x856   : > { %1634 = vmatpush.bf16.msra.mxu3 %v2842_v30  ;;  %1648 = vmatpush.bf16.msra.mxu2 %v2900_v63 }
 0x85a   : > { %1635 = vmatpush.bf16.msra.mxu3 %v2838_v26  ;;  %1649 = vmatpush.bf16.msra.mxu2 %v2986_v31 }
 0x85e   : > { %1661 = vmatpush.bf16.xpose.msrb.mxu3 %v2865_v52  ;;  %1675 = vmatpush.bf16.xpose.msrb.mxu2 %v2947_v22 }
 0x866   : > { %1662 = vmatpush.bf16.xpose.msrb.mxu3 %v2878_v56  ;;  %1676 = vmatpush.bf16.xpose.msrb.mxu2 %v2960_v25 }
 0x86e   : > { %1663 = vmatpush.bf16.xpose.msrb.mxu3 %v2889_v59  ;;  %1677 = vmatpush.bf16.xpose.msrb.mxu2 %v2971_v28 }
 0x876   : > { %1664 = vmatpush.bf16.xpose.msrb.mxu3 %v2896_v61  ;;  %1678 = vmatpush.bf16.xpose.msrb.mxu2 %v2980_v29 }
 0x87e   : > { %1665 = vmatpush.bf16.xpose.msrb.mxu3 %v2904_v0  ;;  %1679 = vmatpush.bf16.xpose.msrb.mxu2 %v2992_v32 }
 0x886   : > { %1666 = vmatpush.bf16.xpose.msrb.mxu3 %v2909_v2  ;;  %1680 = vmatpush.bf16.xpose.msrb.mxu2 %v2999_v33 }
 0x88e   : > { %1667 = vmatpush.bf16.xpose.msrb.mxu3 %v2916_v5  ;;  %1681 = vmatpush.bf16.xpose.msrb.mxu2 %v3007_v35 }
 0x896   : > { %1668 = vmatpush.bf16.xpose.msrb.mxu3 %v2921_v7  ;;  %1682 = vmatpush.bf16.xpose.msrb.mxu2 %v3018_v37 }
 0x8c0   : > { %v1451_v52 = vpop.f32.mrf.mxu3  ;;  %v1465_v56 = vpop.f32.mrf.mxu2 }
 0x8c1   : > { %v3315_v59 = vadd.f32 %v1465_v56, %v1451_v52 }
 0x8c8   : > { %v1453_v61 = vpop.f32.mrf.mxu3  ;;  %v1467_v0 = vpop.f32.mrf.mxu2 }
 0x8c9   : > { %v3317_v22 = vadd.f32 %v1467_v0, %v1453_v61  ;;  %v1564_v61 = vpop.permute.xlu1 %1563 }
 0x8cb   : > { %v2499_v2 = vpack.i.bf16 %v3317_v22, %v3315_v59 }
 0x8d0   : > { %v1484_v25 = vpop.f32.mrf.mxu3  ;;  %v1498_v28 = vpop.f32.mrf.mxu2 }
 0x8d1   : > { %v1503_v5 = vmax.f32 %v1484_v25, %v1498_v28 }
 0x8d3   : > { %1504 = vmax.xlane.f32.xlu2 %v1503_v5 }
 0x8d8   : > { %v1486_v29 = vpop.f32.mrf.mxu3  ;;  %v1500_v32 = vpop.f32.mrf.mxu2 }
 0x8d9   : > { %v1506_v7 = vmax.f32 %v1486_v29, %v1500_v32 }
 0x8db   : > { %1507 = vmax.xlane.f32.xlu0 %v1506_v7 }
 0x8ef   : > { %1656 = vrot.lane.b32.xlu0 %v2817_v14, %s2653_s18 }
 0x946   : > { %v1505_v33 = vpop.xlane.xlu2 %1504 }
 0x947   : > { %v1509_v35 = vsub.f32 %v1484_v25, %v1505_v33  ;;  %v1510_v37 = vsub.f32 %v1498_v28, %v1505_v33 }
 0x949   : > { %v1513_v11 = vmul.f32 1.442695, %v1509_v35  ;;  %v1515_v62 = vmul.f32 1.442695, %v1510_v37 }
 0x94b   : > { %2586 = vpow2.f32 %v1513_v11 }
 0x94c   : > { %2588 = vpow2.f32 %v1515_v62 }
 0x94e   : > { %v1508_v58 = vpop.xlane.xlu0 %1507 }
 0x94f   : > { %v1511_v16 = vsub.f32 %v1486_v29, %v1508_v58  ;;  %v1512_v17 = vsub.f32 %v1500_v32, %v1508_v58 }
 0x951   : > { %v2587_v6 = vpop.eup %2586  ;;  %v1517_v42 = vmul.f32 1.442695, %v1511_v16  ;;  %v1519_v54 = vmul.f32 1.442695, %v1512_v17 }
 0x952   : > { %v2589_v41 = vpop.eup %2588 }
 0x953   : > { %2590 = vpow2.f32 %v1517_v42  ;;  %v1521_v12 = vadd.f32 %v2589_v41, %v2587_v6 }
 0x954   : > { %2592 = vpow2.f32 %v1519_v54 }
 0x955   : > { %1522 = vadd.xlane.f32.xlu2 %v1521_v12 }
 0x959   : > { %v2591_v60 = vpop.eup %2590 }
 0x95a   : > { %v2593_v14 = vpop.eup %2592 }
 0x95b   : > { %v1524_v39 = vadd.f32 %v2593_v14, %v2591_v60 }
 0x95d   : > { %1525 = vadd.xlane.f32.xlu2 %v1524_v39 }
 0x961   : > { %v1657_v54 = vpop.permute.xlu0 %1656 }
 0x9c8   : > { %v1523_v13 = vpop.xlane.xlu2 %1522 }
 0x9c9   : > { %2594 = vrcp.f32 %v1523_v13 }
 0x9cf   : > { %v2595_v36 = vpop.eup %2594 }
 0x9d0   : > { %v1526_v3 = vpop.xlane.xlu2 %1525  ;;  %v1529_v48 = vmul.f32 %v2595_v36, %v2587_v6  ;;  %v1530_v50 = vmul.f32 %v2595_v36, %v2589_v41 }
 0x9d1   : > { %2596 = vrcp.f32 %v1526_v3 }
 0x9d7   : > { %v2597_v43 = vpop.eup %2596 }
 0x9d8   : > { %v1531_v20 = vmul.f32 %v2597_v43, %v2591_v60  ;;  %v1532_v46 = vmul.f32 %v2597_v43, %v2593_v14 }
 0x9da   : > { %v1533_v52 = vpack.c.bf16 %v1531_v20, %v1529_v48  ;;  %v1534_v56 = vpack.c.bf16 %v1532_v46, %v1530_v50 }
 0x9dc   : > { %1543 = vmatmul.bf16.vlgmr.msra.gmra.mxu0 %v1533_v52  ;;  %1557 = vmatmul.bf16.vlgmr.msrb.gmra.mxu1 %v1534_v56 }
 0x9dd   : > { %1721 = vmatpush.bf16.msra.mxu0 %v2860_v51  ;;  %1735 = vmatpush.bf16.msrb.mxu1 %v2942_v21 }
 0x9e1   : > { %1722 = vmatpush.bf16.msra.mxu0 %v2868_v53  ;;  %1736 = vmatpush.bf16.msrb.mxu1 %v2951_v23 }
 0x9e5   : > { %1723 = vmatpush.bf16.msra.mxu0 %v2873_v55  ;;  %1737 = vmatpush.bf16.msrb.mxu1 %v2955_v24 }
 0x9e9   : > { %1724 = vmatpush.bf16.msra.mxu0 %v2881_v57  ;;  %1738 = vmatpush.bf16.msrb.mxu1 %v2964_v27 }
 0x9ec   : > { %2364 = vmatmul.msk.bf16.vlgmr.msrb.gmra.mxu0 %vm958_vm14, %v1564_v61  ;;  %2365 = vmatmul.msk.bf16.vlgmr.msra.gmra.mxu1 %vm958_vm14, %v1564_v61 }
 0x9ed   : > { %1725 = vmatpush.bf16.msra.mxu0 %v2850_v38  ;;  %1739 = vmatpush.bf16.msrb.mxu1 %v2925_v9 }
 0x9f1   : > { %1726 = vmatpush.bf16.msra.mxu0 %v2846_v34  ;;  %1740 = vmatpush.bf16.msrb.mxu1 %v2912_v4 }
 0x9f5   : > { %1727 = vmatpush.bf16.msra.mxu0 %v2842_v30  ;;  %1741 = vmatpush.bf16.msrb.mxu1 %v2900_v63 }
 0x9f9   : > { %1728 = vmatpush.bf16.msra.mxu0 %v2838_v26  ;;  %1742 = vmatpush.bf16.msrb.mxu1 %v2986_v31 }
 0xa59   : > { %v1544_v51 = vpop.f32.mrf.mxu0  ;;  %v1558_v53 = vpop.f32.mrf.mxu1 }
 0xa5a   : > { %v3340_v55 = vadd.f32 %v1558_v53, %v1544_v51 }
 0xa61   : > { %v1546_v57 = vpop.f32.mrf.mxu0  ;;  %v1560_v38 = vpop.f32.mrf.mxu1 }
 0xa62   : > { %v3342_v21 = vadd.f32 %v1560_v38, %v1546_v57 }
 0xa64   : > { %v2504_v34 = vpack.i.bf16 %v3342_v21, %v3340_v55  ;;  %v2448_v55 = vld [vmem:[%s2751_s14] sm:$0xff] }
 0xa69   : > { %v1577_v4 = vpop.f32.mrf.mxu0  ;;  %v1591_v9 = vpop.f32.mrf.mxu1 }
 0xa6a   : > { %v1596_v30 = vmax.f32 %v1577_v4, %v1591_v9 }
 0xa6c   : > { %1597 = vmax.xlane.f32.xlu2 %v1596_v30 }
 0xa71   : > { %v1579_v63 = vpop.f32.mrf.mxu0  ;;  %v1593_v23 = vpop.f32.mrf.mxu1 }
 0xa72   : > { %v1599_v26 = vmax.f32 %v1579_v63, %v1593_v23 }
 0xa74   : > { %1600 = vmax.xlane.f32.xlu1 %v1599_v26 }
 0xa8d   : > { %2490 = vrot.lane.b32.xlu1 %v2489_v15, %s2654_s26 }
 0xa95   : > { %2500 = vrot.lane.b32.xlu1 %v2499_v2, %s2655_s28 }
 0xadf   : > { %v1598_v24 = vpop.xlane.xlu2 %1597 }
 0xae0   : > { %v1602_v27 = vsub.f32 %v1577_v4, %v1598_v24  ;;  %v1603_v31 = vsub.f32 %v1591_v9, %v1598_v24 }
 0xae2   : > { %v1606_v0 = vmul.f32 1.442695, %v1602_v27  ;;  %v1608_v25 = vmul.f32 1.442695, %v1603_v31 }
 0xae4   : > { %2598 = vpow2.f32 %v1606_v0  ;;  %v3469_v0 = vpack.i.bf16 %v3223_v44, %v3220_v8 }
 0xae5   : > { %2600 = vpow2.f32 %v1608_v25  ;;  %v3470_v25 = vpack.i.bf16 %v3275_v19, %v3273_v45  ;;  %v2449_v19 = vld [vmem:[%s2751_s14 + $0x8] sm:$0xff] }
 0xae6   : > { %1850 = vmatpush.bf16.msra.mxu1 %v2449_v19 }
 0xae7   : > { %v1601_v28 = vpop.xlane.xlu1 %1600 }
 0xae8   : > { %v1604_v5 = vsub.f32 %v1579_v63, %v1601_v28  ;;  %v1605_v29 = vsub.f32 %v1593_v23, %v1601_v28 }
 0xaea   : > { %v2599_v32 = vpop.eup %2598  ;;  %v1610_v7 = vmul.f32 1.442695, %v1604_v5  ;;  %v1612_v33 = vmul.f32 1.442695, %v1605_v29  ;;  %1851 = vmatpush.bf16.msra.mxu1 %v2448_v55 }
 0xaeb   : > { %v2601_v1 = vpop.eup %2600 }
 0xaec   : > { %2602 = vpow2.f32 %v1610_v7  ;;  %v1614_v10 = vadd.f32 %v2601_v1, %v2599_v32 }
 0xaed   : > { %2604 = vpow2.f32 %v1612_v33 }
 0xaee   : > { %1615 = vadd.xlane.f32.xlu2 %v1614_v10 }
 0xaf2   : > { %v2603_v15 = vpop.eup %2602 }
 0xaf3   : > { %v2605_v59 = vpop.eup %2604 }
 0xaf4   : > { %v1617_v22 = vadd.f32 %v2605_v59, %v2603_v15 }
 0xaf6   : > { %1618 = vadd.xlane.f32.xlu2 %v1617_v22 }
 0xb61   : > { %v1616_v2 = vpop.xlane.xlu2 %1615 }
 0xb62   : > { %2606 = vrcp.f32 %v1616_v2 }
 0xb68   : > { %v2607_v37 = vpop.eup %2606 }
 0xb69   : > { %v1619_v35 = vpop.xlane.xlu2 %1618  ;;  %v1622_v62 = vmul.f32 %v2607_v37, %v2599_v32  ;;  %v1623_v58 = vmul.f32 %v2607_v37, %v2601_v1  ;;  %v2491_v37 = vpop.permute.xlu1 %2490 }
 0xb6a   : > { %2608 = vrcp.f32 %v1619_v35 }
 0xb70   : > { %v2609_v11 = vpop.eup %2608 }
 0xb71   : > { %v1624_v16 = vmul.f32 %v2609_v11, %v2603_v15  ;;  %v1625_v17 = vmul.f32 %v2609_v11, %v2605_v59 }
 0xb73   : > { %v1627_v6 = vpack.c.bf16 %v1625_v17, %v1623_v58  ;;  %v1626_v42 = vpack.c.bf16 %v1624_v16, %v1622_v62  ;;  %v1096_v16 = vadd.f32 %v3214_v40, %v3197_v47 }
 0xb75   : > { %1636 = vmatmul.bf16.vlgmr.msra.gmra.mxu3 %v1626_v42  ;;  %1650 = vmatmul.bf16.vlgmr.msra.gmra.mxu2 %v1627_v6 }
 0xb85   : > { %2366 = vmatmul.msk.bf16.vlgmr.msrb.gmra.mxu3 %vm958_vm14, %v1657_v54  ;;  %2367 = vmatmul.msk.bf16.vlgmr.msrb.gmra.mxu2 %vm958_vm14, %v1657_v54 }
 0xbf8   : > { %v1637_v41 = vpop.f32.mrf.mxu3  ;;  %v1651_v12 = vpop.f32.mrf.mxu2 }
 0xbf9   : > { %v1652_v60 = vadd.f32 %v1651_v12, %v1637_v41  ;;  %v2493_v41 = vunpack.i.h.bf16 %v2491_v37  ;;  %v2492_v12 = vunpack.i.l.bf16 %v2491_v37 }
 0xc00   : > { %v1639_v14 = vpop.f32.mrf.mxu3  ;;  %v1653_v39 = vpop.f32.mrf.mxu2 }
 0xc01   : > { %v1654_v13 = vadd.f32 %v1653_v39, %v1639_v14 }
 0xc03   : > { %v2509_v3 = vpack.i.bf16 %v1654_v13, %v1652_v60  ;;  %v2501_v60 = vpop.permute.xlu1 %2500 }
 0xc04   : > { %v2503_v47 = vunpack.i.h.bf16 %v2501_v60  ;;  %v2502_v40 = vunpack.i.l.bf16 %v2501_v60 }
 0xc08   : > { %v1670_v36 = vpop.f32.mrf.mxu3  ;;  %v1684_v43 = vpop.f32.mrf.mxu2 }
 0xc09   : > { %v1689_v48 = vmax.f32 %v1670_v36, %v1684_v43 }
 0xc0b   : > { %1690 = vmax.xlane.f32.xlu2 %v1689_v48 }
 0xc10   : > { %v1672_v50 = vpop.f32.mrf.mxu3  ;;  %v1686_v20 = vpop.f32.mrf.mxu2 }
 0xc11   : > { %v1692_v46 = vmax.f32 %v1672_v50, %v1686_v20 }
 0xc13   : > { %1693 = vmax.xlane.f32.xlu2 %v1692_v46 }
 0xc7e   : > { %v1691_v52 = vpop.xlane.xlu2 %1690 }
 0xc7f   : > { %v1695_v56 = vsub.f32 %v1670_v36, %v1691_v52  ;;  %v1696_v61 = vsub.f32 %v1684_v43, %v1691_v52 }
 0xc81   : > { %v1699_v51 = vmul.f32 1.442695, %v1695_v56  ;;  %v1701_v53 = vmul.f32 1.442695, %v1696_v61 }
 0xc83   : > { %2610 = vpow2.f32 %v1699_v51 }
 0xc84   : > { %2612 = vpow2.f32 %v1701_v53 }
 0xc86   : > { %v1694_v57 = vpop.xlane.xlu2 %1693 }
 0xc87   : > { %v1697_v38 = vsub.f32 %v1672_v50, %v1694_v57  ;;  %v1698_v4 = vsub.f32 %v1686_v20, %v1694_v57 }
 0xc89   : > { %v2611_v9 = vpop.eup %2610  ;;  %v1703_v30 = vmul.f32 1.442695, %v1697_v38  ;;  %v1705_v63 = vmul.f32 1.442695, %v1698_v4 }
 0xc8a   : > { %v2613_v23 = vpop.eup %2612 }
 0xc8b   : > { %2614 = vpow2.f32 %v1703_v30  ;;  %v1707_v26 = vadd.f32 %v2613_v23, %v2611_v9 }
 0xc8c   : > { %2616 = vpow2.f32 %v1705_v63 }
 0xc8d   : > { %1708 = vadd.xlane.f32.xlu0 %v1707_v26 }
 0xc91   : > { %v2615_v24 = vpop.eup %2614 }
 0xc92   : > { %v2617_v27 = vpop.eup %2616 }
 0xc93   : > { %v1710_v31 = vadd.f32 %v2617_v27, %v2615_v24 }
 0xc95   : > { %1711 = vadd.xlane.f32.xlu2 %v1710_v31 }
 0xca1   : > { %2510 = vrot.lane.b32.xlu0 %v2509_v3, %s2656_s29 }
 0xcad   : > { %2485 = vrot.lane.b32.xlu2 %v3469_v0, %s2657_s12 }
 0xcb5   : > { %2495 = vrot.lane.b32.xlu2 %v3470_v25, %s2658_s20 }
 0xcbd   : > { %2505 = vrot.lane.b32.xlu2 %v2504_v34, %s2659_s15 }
 0xd00   : > { %v1709_v28 = vpop.xlane.xlu0 %1708 }
 0xd01   : > { %2618 = vrcp.f32 %v1709_v28 }
 0xd07   : > { %v2619_v29 = vpop.eup %2618 }
 0xd08   : > { %v1712_v5 = vpop.xlane.xlu2 %1711  ;;  %v1715_v8 = vmul.f32 %v2619_v29, %v2611_v9  ;;  %v1716_v44 = vmul.f32 %v2619_v29, %v2613_v23  ;;  %v3374_v23 = vld [vmem:[%s2772_s13] sm:$0x3f] }
 0xd09   : > { %2620 = vrcp.f32 %v1712_v5  ;;  %v1860_v26 = vperm.slane %v3374_v23, 4  ;;  %v2636_v5 = vld [vmem:[%s3462_s11 + $0x8] sm:$0xff] }
 0xd0f   : > { %v2621_v32 = vpop.eup %2620 }
 0xd10   : > { %v1717_v7 = vmul.f32 %v2621_v32, %v2615_v24  ;;  %v1718_v33 = vmul.f32 %v2621_v32, %v2617_v27  ;;  %v2486_v35 = vpop.permute.xlu2 %2485  ;;  %v2635_v27 = vld [vmem:[%s3462_s11] sm:$0xff] }
 0xd11   : > { %v2488_v62 = vunpack.i.h.bf16 %v2486_v35  ;;  %v2487_v58 = vunpack.i.l.bf16 %v2486_v35 }
 0xd12   : > { %v1719_v1 = vpack.c.bf16 %v1717_v7, %v1715_v8  ;;  %v1720_v45 = vpack.c.bf16 %v1718_v33, %v1716_v44 }
 0xd13   : > { %v1806_v17 = vsel %vm958_vm14, %v1096_v16, %v2488_v62  ;;  %v1805_v6 = vsel %vm958_vm14, %v3203_v49, %v2487_v58  ;;  %v2511_v50 = vpop.permute.xlu0 %2510 }
 0xd14   : > { %1729 = vmatmul.bf16.vlgmr.msra.gmra.mxu0 %v1719_v1  ;;  %1743 = vmatmul.bf16.vlgmr.msrb.gmra.mxu1 %v1720_v45  ;;  %v1808_v39 = vsel %vm1807_vm15, %v1805_v6, %v2492_v12  ;;  %v1809_v13 = vsel %vm1807_vm15, %v1806_v17, %v2493_v41  ;;  %v2513_v56 = vunpack.i.h.bf16 %v2511_v50  ;;  %v2512_v61 = vunpack.i.l.bf16 %v2511_v50 }
 0xd18   : > { %v2496_v11 = vpop.permute.xlu2 %2495 }
 0xd19   : > { %v2498_v42 = vunpack.i.h.bf16 %v2496_v11  ;;  %v2497_v54 = vunpack.i.l.bf16 %v2496_v11 }
 0xd1b   : > { %v1812_v3 = vsel %vm1810_vm0, %v1809_v13, %v2498_v42  ;;  %v1811_v36 = vsel %vm1810_vm0, %v1808_v39, %v2497_v54 }
 0xd1c   : > { %v1813_v20 = vsel %vm797_vm13, %v1811_v36, %v2502_v40  ;;  %v1814_v49 = vsel %vm797_vm13, %v1812_v3, %v2503_v47 }
 0xd20   : > { %v2506_v14 = vpop.permute.xlu2 %2505 }
 0xd21   : > { %v2508_v43 = vunpack.i.h.bf16 %v2506_v14  ;;  %v2507_v48 = vunpack.i.l.bf16 %v2506_v14 }
 0xd23   : > { %v1816_v46 = vsel %vm1815_vm1, %v1813_v20, %v2507_v48  ;;  %v1817_v52 = vsel %vm1815_vm1, %v1814_v49, %v2508_v43  ;;  %v1910_v48 = vperm.slane %v3374_v23, 3 }
 0xd24   : > { %v1819_v38 = vsel %vm1818_vm3, %v1816_v46, %v2512_v61  ;;  %v1820_v4 = vsel %vm1818_vm3, %v1817_v52, %v2513_v56  ;;  %v2519_v52 = vld [vmem:[%s493_s25] ss:$0 sm:$0xff] }
 0xd91   : > { %v1730_v21 = vpop.f32.mrf.mxu0  ;;  %v1744_v34 = vpop.f32.mrf.mxu1 }
 0xd92   : > { %v1745_v59 = vadd.f32 %v1744_v34, %v1730_v21 }
 0xd99   : > { %v1732_v10 = vpop.f32.mrf.mxu0  ;;  %v1746_v15 = vpop.f32.mrf.mxu1 }
 0xd9a   : > { %v1747_v22 = vadd.f32 %v1746_v15, %v1732_v10  ;;  %v2451_v15 = vld [vmem:[%s2756_s22 + $0x8] sm:$0xff] }
 0xd9b   : > { %1943 = vmatpush.bf16.msrb.mxu1 %v2451_v15 }
 0xd9c   : > { %v2514_v2 = vpack.i.bf16 %v1747_v22, %v1745_v59 }
 0xd9e   : > { %2515 = vrot.lane.b32.xlu1 %v2514_v2, %s2660_s3  ;;  %v2450_v2 = vld [vmem:[%s2756_s22] sm:$0xff] }
 0xd9f   : > { %1944 = vmatpush.bf16.msrb.mxu1 %v2450_v2  ;;  %v2453_v2 = vld [vmem:[%s2767_s21 + $0x8] sm:$0xff] }
 0xe10   : > { %v2516_v51 = vpop.permute.xlu1 %2515 }
 0xe11   : > { %v2518_v53 = vunpack.i.h.bf16 %v2516_v51  ;;  %v2517_v57 = vunpack.i.l.bf16 %v2516_v51 }
 0xe13   : > { %v1822_v9 = vsel %vm1821_vm4, %v1819_v38, %v2517_v57  ;;  %v1823_v30 = vsel %vm1821_vm4, %v1820_v4, %v2518_v53  ;;  %v2459_v53 = vld [vmem:[%s2767_s21 + $0x38] sm:$0xff] }
 0xe14   : > { %v1824_v63 = vpack.c.bf16 %v1823_v30, %v1822_v9  ;;  %2097 = vmatpush.bf16.msrb.mxu0 %v2459_v53  ;;  %v2458_v9 = vld [vmem:[%s2767_s21 + $0x30] sm:$0xff] }
 0xe16   : > { %2376 = vmatmul.msk.bf16.vlgmr.msra.gmra.mxu1 %vm549_vm2, %v1824_v63 }
 0xe18   : > { %2098 = vmatpush.bf16.msrb.mxu0 %v2458_v9 }
 0xe93   : > { %v1853_v24 = vpop.f32.mrf.mxu1 }
 0xe94   : > { %v1858_v31 = vadd.f32 %v2635_v27, %v1853_v24  ;;  %v2457_v24 = vld [vmem:[%s2767_s21 + $0x28] sm:$0xff] }
 0xe95   : > { %2099 = vmatpush.bf16.msrb.mxu0 %v2457_v24 }
 0xe96   : > { %v3380_v0 = vadd.f32 %v1860_v26, %v1858_v31 }
 0xe98   : > { %v1863_v25 = vsel %vm549_vm2, %v3380_v0, 0.0 }
 0xe99   : > { %1864 = vadd.xlane.f32.xlu2 %v1863_v25  ;;  %v2456_v25 = vld [vmem:[%s2767_s21 + $0x20] sm:$0xff] }
 0xe9a   : > { %2100 = vmatpush.bf16.msrb.mxu0 %v2456_v25 }
 0xe9b   : > { %v1855_v28 = vpop.f32.mrf.mxu1 }
 0xe9c   : > { %v1859_v29 = vadd.f32 %v2636_v5, %v1855_v28 }
 0xe9e   : > { %v3387_v32 = vadd.f32 %v1860_v26, %v1859_v29 }
 0xea0   : > { %v1866_v8 = vsel %vm549_vm2, %v3387_v32, 0.0 }
 0xea1   : > { %1867 = vadd.xlane.f32.xlu1 %v1866_v8 }
 0xf0c   : > { %v1865_v44 = vpop.xlane.xlu2 %1864 }
 0xf0d   : > { %v1869_v7 = vmul.f32 %v1865_v44, %v2800_v18  ;;  %v2455_v44 = vld [vmem:[%s2767_s21 + $0x18] sm:$0xff] }
 0xf0e   : > { %2101 = vmatpush.bf16.msrb.mxu0 %v2455_v44 }
 0xf0f   : > { %v1871_v33 = vsub.f32 %v3380_v0, %v1869_v7 }
 0xf11   : > { %v1873_v1 = vmul.f32 %v1871_v33, %v1871_v33 }
 0xf13   : > { %v1875_v45 = vsel %vm549_vm2, %v1873_v1, 0.0 }
 0xf14   : > { %1876 = vadd.xlane.f32.xlu0 %v1875_v45  ;;  %v1868_v19 = vpop.xlane.xlu1 %1867 }
 0xf15   : > { %v1870_v55 = vmul.f32 %v1868_v19, %v2800_v18  ;;  %v2454_v19 = vld [vmem:[%s2767_s21 + $0x10] sm:$0xff] }
 0xf16   : > { %2102 = vmatpush.bf16.msrb.mxu0 %v2454_v19  ;;  %v2048_v19 = vperm.slane %v3374_v23, 5 }
 0xf17   : > { %v1872_v21 = vsub.f32 %v3387_v32, %v1870_v55 }
 0xf19   : > { %v1874_v34 = vmul.f32 %v1872_v21, %v1872_v21 }
 0xf1a   : > { %2103 = vmatpush.bf16.msrb.mxu0 %v2453_v2 }
 0xf1b   : > { %v1878_v10 = vsel %vm549_vm2, %v1874_v34, 0.0 }
 0xf1c   : > { %1879 = vadd.xlane.f32.xlu2 %v1878_v10 }
 0xf87   : > { %v1877_v59 = vpop.xlane.xlu0 %1876 }
 0xf88   : > { %v1881_v22 = vmul.f32 %v1877_v59, %v2800_v18 }
 0xf8a   : > { %v1883_v35 = vadd.f32 1e-05, %v1881_v22 }
 0xf8c   : > { %2622 = vrsqrt.f32 %v1883_v35  ;;  %vm1891_vm6 = vweird.f32 %v1883_v35 }
 0xf8f   : > { %v1880_v37 = vpop.xlane.xlu2 %1879 }
 0xf90   : > { %v1882_v11 = vmul.f32 %v1880_v37, %v2800_v18  ;;  %v1907_v18 = vperm.slane %v3374_v23, 2 }
 0xf92   : > { %v2623_v62 = vpop.eup %2622  ;;  %v1884_v58 = vadd.f32 1e-05, %v1882_v11 }
 0xf93   : > { %v1886_v16 = vmul.f32 %v2623_v62, %v1883_v35  ;;  %vm1892_vm5 = vweird.f32 %v2623_v62 }
 0xf94   : > { %2624 = vrsqrt.f32 %v1884_v58  ;;  %vm1893_vm7 = vmor %vm1891_vm6, %vm1892_vm5  ;;  %vm1901_vm9 = vweird.f32 %v1884_v58 }
 0xf95   : > { %v1887_v17 = vmul.f32 %v2623_v62, %v1886_v16 }
 0xf97   : > { %v1888_v6 = vmul.f32 0.5, %v1887_v17 }
 0xf99   : > { %v1889_v42 = vsub.f32 1.5, %v1888_v6  ;;  %v2452_v6 = vld [vmem:[%s2767_s21] sm:$0xff] }
 0xf9a   : > { %v2625_v54 = vpop.eup %2624  ;;  %2104 = vmatpush.bf16.msrb.mxu0 %v2452_v6 }
 0xf9b   : > { %v1890_v41 = vmul.f32 %v2623_v62, %v1889_v42  ;;  %v1896_v12 = vmul.f32 %v2625_v54, %v1884_v58  ;;  %vm1902_vm8 = vweird.f32 %v2625_v54 }
 0xf9c   : > { %vm1903_vm10 = vmor %vm1901_vm9, %vm1902_vm8 }
 0xf9d   : > { %v1897_v60 = vmul.f32 %v2625_v54, %v1896_v12  ;;  %v1894_v14 = vsel %vm1893_vm7, %v2623_v62, %v1890_v41 }
 0xf9e   : > { %v1905_v3 = vmul.f32 %v1894_v14, %v1871_v33 }
 0xf9f   : > { %v1898_v39 = vmul.f32 0.5, %v1897_v60 }
 0xfa0   : > { %v1908_v47 = vmul.f32 %v1907_v18, %v1905_v3 }
 0xfa1   : > { %v1899_v13 = vsub.f32 1.5, %v1898_v39 }
 0xfa2   : > { %v1911_v20 = vadd.f32 %v1910_v48, %v1908_v47 }
 0xfa3   : > { %v1900_v36 = vmul.f32 %v2625_v54, %v1899_v13 }
 0xfa5   : > { %v1904_v43 = vsel %vm1903_vm10, %v2625_v54, %v1900_v36 }
 0xfa6   : > { %v1906_v40 = vmul.f32 %v1904_v43, %v1872_v21 }
 0xfa8   : > { %v1909_v50 = vmul.f32 %v1907_v18, %v1906_v40 }
 0xfaa   : > { %v1912_v49 = vadd.f32 %v1910_v48, %v1909_v50 }
 0xfac   : > { %v1913_v46 = vpack.c.bf16 %v1912_v49, %v1911_v20 }
 0xfae   : > { %2385 = vmatmul.msk.bf16.vlgmr.msrb.gmra.mxu1 %vm549_vm2, %v1913_v46 }
0x102b   : > { %v1946_v56 = vpop.f32.mrf.mxu1 }
0x102c   : > { %v3409_v61 = vadd.f32 %v2519_v52, %v1946_v56 }
0x102e   : > { %v3412_v51 = vmul.f32 0.70710677, %v3409_v61 }
0x1030   : > { %v1955_v57 = vand.u32 2147483647, %v3412_v51  ;;  %v2009_v15 = vsub.f32 0.0, %v3412_v51  ;;  %vm2021_vm4 = vcmp.ge.f32.partialorder %v3412_v51, 0.0 }
0x1032   : > { %v1957_v38 = vmul.f32 0.3275911, %v1955_v57  ;;  %v2011_v62 = vmul.f32 %v2009_v15, %v3412_v51 }
0x1033   : > { %v1948_v4 = vpop.f32.mrf.mxu1 }
0x1034   : > { %v1959_v30 = vadd.f32 1.0, %v1957_v38  ;;  %v3417_v63 = vadd.f32 %v2519_v52, %v1948_v4  ;;  %v2013_v12 = vmul.f32 1.442695, %v2011_v62 }
0x1036   : > { %2626 = vrcp.f32 %v1959_v30  ;;  %v3420_v26 = vmul.f32 0.70710677, %v3417_v63  ;;  %v1972_v7 = vand.u32 2147483648, %v1959_v30  ;;  %v1970_v1 = vand.u32 2147483647, %v1959_v30 }
0x1037   : > { %vm1966_vm12 = vweird.f32 %v1959_v30  ;;  %v1952_v44 = vmul.f32 0.5, %v3417_v63 }
0x1038   : > { %v1956_v27 = vand.u32 2147483647, %v3420_v26  ;;  %v1973_v55 = vor.u32 1.1754944e-38, %v1972_v7  ;;  %vm1971_vm14 = vcmp.eq.f32.partialorder %v1970_v1, 8.507059e+37  ;;  %v2010_v13 = vsub.f32 0.0, %v3420_v26 }
0x1039   : > { %vm2022_vm5 = vcmp.ge.f32.partialorder %v3420_v26, 0.0 }
0x103a   : > { %v1958_v31 = vmul.f32 0.3275911, %v1956_v27  ;;  %v2012_v48 = vmul.f32 %v2010_v13, %v3420_v26 }
0x103c   : > { %v2627_v28 = vpop.eup %2626  ;;  %v1960_v29 = vadd.f32 1.0, %v1958_v31  ;;  %v2015_v49 = vmul.f32 1.442695, %v2012_v48 }
0x103d   : > { %v1962_v5 = vmul.f32 %v2627_v28, %v1959_v30  ;;  %vm1967_vm11 = vweird.f32 %v2627_v28 }
0x103e   : > { %2628 = vrcp.f32 %v1960_v29  ;;  %vm1968_vm13 = vmor %vm1966_vm12, %vm1967_vm11  ;;  %v1987_v11 = vand.u32 2147483648, %v1960_v29  ;;  %v1985_v16 = vand.u32 2147483647, %v1960_v29  ;;  %vm1981_vm0 = vweird.f32 %v1960_v29 }
0x103f   : > { %v1963_v8 = vsub.f32 1.0, %v1962_v5  ;;  %2630 = vpow2.f32 %v2013_v12 }
0x1040   : > { %v1988_v41 = vor.u32 1.1754944e-38, %v1987_v11  ;;  %vm1986_vm3 = vcmp.eq.f32.partialorder %v1985_v16, 8.507059e+37  ;;  %2632 = vpow2.f32 %v2015_v49 }
0x1041   : > { %v1964_v33 = vmul.f32 %v2627_v28, %v1963_v8  ;;  %v1951_v8 = vmul.f32 0.5, %v3409_v61 }
0x1043   : > { %v1965_v45 = vadd.f32 %v2627_v28, %v1964_v33 }
0x1044   : > { %v2629_v21 = vpop.eup %2628 }
0x1045   : > { %v1969_v34 = vsel %vm1968_vm13, %v2627_v28, %v1965_v45  ;;  %v1977_v59 = vmul.f32 %v2629_v21, %v1960_v29  ;;  %vm1982_vm15 = vweird.f32 %v2629_v21  ;;  %v2631_v46 = vpop.eup %2630 }
0x1046   : > { %v1974_v10 = vsel %vm1971_vm14, %v1973_v55, %v1969_v34  ;;  %vm1983_vm1 = vmor %vm1981_vm0, %vm1982_vm15  ;;  %v2633_v24 = vpop.eup %2632 }
0x1047   : > { %v1991_v22 = vmul.f32 1.0614054, %v1974_v10  ;;  %v1978_v35 = vsub.f32 1.0, %v1977_v59 }
0x1049   : > { %v1993_v37 = vadd.f32 -1.4531521, %v1991_v22  ;;  %v1979_v58 = vmul.f32 %v2629_v21, %v1978_v35 }
0x104b   : > { %v1995_v17 = vmul.f32 %v1993_v37, %v1974_v10  ;;  %v1980_v42 = vadd.f32 %v2629_v21, %v1979_v58 }
0x104d   : > { %v1997_v54 = vadd.f32 1.4214138, %v1995_v17  ;;  %v1984_v60 = vsel %vm1983_vm1, %v2629_v21, %v1980_v42 }
0x104e   : > { %v1989_v39 = vsel %vm1986_vm3, %v1988_v41, %v1984_v60 }
0x104f   : > { %v1999_v14 = vmul.f32 %v1997_v54, %v1974_v10  ;;  %v1992_v18 = vmul.f32 1.0614054, %v1989_v39 }
0x1051   : > { %v2001_v3 = vadd.f32 -0.28449672, %v1999_v14  ;;  %v1994_v36 = vadd.f32 -1.4531521, %v1992_v18 }
0x1053   : > { %v2003_v43 = vmul.f32 %v2001_v3, %v1974_v10  ;;  %v1996_v47 = vmul.f32 %v1994_v36, %v1989_v39 }
0x1055   : > { %v2005_v40 = vadd.f32 0.2548296, %v2003_v43  ;;  %v1998_v50 = vadd.f32 1.4214138, %v1996_v47 }
0x1057   : > { %v2007_v20 = vmul.f32 %v2005_v40, %v1974_v10  ;;  %v2000_v52 = vmul.f32 %v1998_v50, %v1989_v39 }
0x1059   : > { %v2017_v56 = vmul.f32 %v2631_v46, %v2007_v20  ;;  %v2002_v53 = vadd.f32 -0.28449672, %v2000_v52 }
0x105b   : > { %v2019_v57 = vsub.f32 1.0, %v2017_v56  ;;  %v2004_v38 = vmul.f32 %v2002_v53, %v1989_v39 }
0x105d   : > { %v2006_v4 = vadd.f32 0.2548296, %v2004_v38  ;;  %v2023_v9 = vsub.f32 0.0, %v2019_v57 }
0x105f   : > { %v2008_v30 = vmul.f32 %v2006_v4, %v1989_v39  ;;  %v2025_v31 = vsel %vm2021_vm4, %v2019_v57, %v2023_v9 }
0x1060   : > { %v2027_v5 = vadd.f32 1.0, %v2025_v31 }
0x1061   : > { %v2018_v27 = vmul.f32 %v2633_v24, %v2008_v30 }
0x1062   : > { %v2029_v33 = vmul.f32 %v2027_v5, %v1951_v8 }
0x1063   : > { %v2020_v25 = vsub.f32 1.0, %v2018_v27 }
0x1065   : > { %v2024_v28 = vsub.f32 0.0, %v2020_v25 }
0x1067   : > { %v2026_v29 = vsel %vm2022_vm5, %v2020_v25, %v2024_v28 }
0x1068   : > { %v2028_v7 = vadd.f32 1.0, %v2026_v29 }
0x106a   : > { %v2030_v1 = vmul.f32 %v2028_v7, %v1952_v44 }
0x106c   : > { %v2031_v45 = vpack.c.bf16 %v2030_v1, %v2029_v33 }
0x106e   : > { %2105 = vmatmul.bf16.vlgmr.msrb.gmra.mxu0 %v2031_v45 }
0x10eb   : > { %v2106_v55 = vpop.f32.mrf.mxu0 }
0x10ec   : > { %v2107_v51 = vadd.f32 %v2106_v55, %v2048_v19 }
0x10ee   : > { %v2111_v21 = vadd.f32 %v2107_v51, %v3380_v0 }
0x10f0   : > { %2113 = vst.msk [vmem:[%s3462_s11] sm:$0xff] %vm549_vm2, %v2111_v21 }
0x10f3   : > { %v2108_v26 = vpop.f32.mrf.mxu0 }
0x10f4   : > { %v2109_v61 = vadd.f32 %v2108_v26, %v2048_v19 }
0x10f6   : > { %v2112_v63 = vadd.f32 %v2109_v61, %v3387_v32 }
0x10f8   : > { %2114 = vst.msk [vmem:[%s3462_s11 + $0x8] sm:$0xff] %vm549_vm2, %v2112_v63 }
0x10f9 PF: > { %s3471_s30 = sld [smem:[#allocation2_spill]] }
0x10ff   : > { %s21_s17 = sadd.s32 1, %s3471_s30  }
0x1100   : > { %p18_p5 = scmp.ge.s32.totalorder %s21_s17, 6  }
0x1102   :  { %20 = sbr.rel (!%p18_p5) target bundleno = 3 (0x3), region = 115 }

</bundles_post_ra>
